<compile_context>
chip_gen: v6e
topology: v6e:2x2x1
jax: 0.10.0
libtpu: 0.0.40
codegen_flags: <defaults>
</compile_context>

<pallas_src>
import functools

import jax
import jax.numpy as jnp
from jax.experimental import pallas as pl
from jax.experimental.pallas import tpu as pltpu


def _adaptive_bounds(in_size, out_size):
    # PyTorch adaptive pooling window: start = floor(i*L/O), end = ceil((i+1)*L/O)
    return [
        ((i * in_size) // out_size, -((-(i + 1) * in_size) // out_size))
        for i in range(out_size)
    ]


def _pool_last(y, out_size):
    """Adaptive max over the last axis -> size `out_size` (all bounds static)."""
    length = y.shape[-1]
    if length % out_size == 0:
        k = length // out_size
        return jnp.max(y.reshape(y.shape[:-1] + (out_size, k)), axis=-1)
    parts = [jnp.max(y[..., b0:b1], axis=-1, keepdims=True)
             for b0, b1 in _adaptive_bounds(length, out_size)]
    return jnp.concatenate(parts, axis=-1)


def _pool_second_last(y, out_size):
    """Adaptive max over the second-to-last axis -> size `out_size`."""
    length = y.shape[-2]
    if length % out_size == 0:
        k = length // out_size
        new_shape = y.shape[:-2] + (out_size, k, y.shape[-1])
        return jnp.max(y.reshape(new_shape), axis=-2)
    parts = [jnp.max(y[..., b0:b1, :], axis=-2, keepdims=True)
             for b0, b1 in _adaptive_bounds(length, out_size)]
    return jnp.concatenate(parts, axis=-2)


def _conv1x1_vpu(x, w_ref, co, c_in):
    """y[co] = sum_ci w[co, ci] * x[ci] as VPU scalar-weighted plane sums."""
    y = w_ref[co, 0] * x[0]
    for ci in range(1, c_in):
        y = y + w_ref[co, ci] * x[ci]
    return y


def _seg_head_window_kernel(x_ref, w_ref, b_ref, o_ref, *, c_in, c_out, s):
    # x_ref: (C_in, d_win, H, W) VMEM — one uniform adaptive-D window slab.
    # w_ref: (C_out, C_in) SMEM; b_ref: (C_out,) SMEM; o_ref: (C_out, S, S) VMEM.
    x = x_ref[...].astype(jnp.float32)
    for co in range(c_out):
        y = _conv1x1_vpu(x, w_ref, co, c_in)    # (d_win, H, W)
        y = jnp.max(y, axis=0)                  # whole D window (cheap major-dim max)
        y = _pool_last(y, s)                    # W windows -> (H, S)
        y = _pool_second_last(y, s)             # H windows -> (S, S)
        o_ref[co, :, :] = y + b_ref[co]         # bias after max (per-channel const)


def _seg_head_full_kernel(x_ref, w_ref, b_ref, o_ref, *, c_in, c_out, pd, s):
    # General path (overlapping / non-uniform adaptive D windows).
    # x_ref: (C_in, D, H, W) VMEM; o_ref: (PD, C_out, S, S) VMEM.
    x = x_ref[...].astype(jnp.float32)
    d_bounds = _adaptive_bounds(x.shape[1], pd)
    for co in range(c_out):
        y = _conv1x1_vpu(x, w_ref, co, c_in)    # (D, H, W)
        y = _pool_last(y, s)                    # W windows -> (D, H, S)
        y = _pool_second_last(y, s)             # H windows -> (D, S, S)
        b = b_ref[co]
        for k, (d0, d1) in enumerate(d_bounds):
            o_ref[k, co, :, :] = jnp.max(y[d0:d1], axis=0) + b


def segmentation_head(x, weight, bias, inputs_size):
    """x: (N, C_in, D, H, W); weight: (C_out, C_in[,1,1,1]); bias: (C_out,)."""
    N, C_in, D, H, W = x.shape
    C_out = weight.shape[0]
    PD, S = C_out, inputs_size  # AdaptiveMaxPool3d((out_channels, S, S))

    w = weight.reshape(C_out, C_in).astype(jnp.float32)
    b = bias.astype(jnp.float32)
    smem_spec = pl.BlockSpec(memory_space=pltpu.MemorySpace.SMEM)
    out_shape = jax.ShapeDtypeStruct((N, PD, C_out, S, S), jnp.float32)

    if D % PD == 0:
        # Uniform, independent D windows: one window slab per grid step.
        d_win = D // PD
        kernel = functools.partial(
            _seg_head_window_kernel, c_in=C_in, c_out=C_out, s=S)
        out = pl.pallas_call(
            kernel,
            out_shape=out_shape,
            grid=(N, PD),
            in_specs=[
                pl.BlockSpec((None, C_in, d_win, H, W),
                             lambda n, j: (n, 0, j, 0, 0)),
                smem_spec,   # weight (C_out, C_in) in SMEM
                smem_spec,   # bias (C_out,) in SMEM
            ],
            out_specs=pl.BlockSpec((None, None, C_out, S, S),
                                   lambda n, j: (n, j, 0, 0, 0)),
            compiler_params=pltpu.CompilerParams(
                dimension_semantics=("parallel", "parallel"),
                vmem_limit_bytes=32 * 1024 * 1024),
        )(x, w, b)
    else:
        # TODO(synk): overlapping adaptive D windows (D % out_channels != 0) fall
        # back to one whole-volume block per batch; grid-tiling them needs
        # PrefetchScalarGridSpec window starts + pl.Element offsets.
        kernel = functools.partial(
            _seg_head_full_kernel, c_in=C_in, c_out=C_out, pd=PD, s=S)
        out = pl.pallas_call(
            kernel,
            out_shape=out_shape,
            grid=(N,),
            in_specs=[
                pl.BlockSpec((None, C_in, D, H, W),
                             lambda n: (n, 0, 0, 0, 0)),
                smem_spec,
                smem_spec,
            ],
            out_specs=pl.BlockSpec((None, PD, C_out, S, S),
                                   lambda n: (n, 0, 0, 0, 0)),
            compiler_params=pltpu.CompilerParams(
                dimension_semantics=("parallel",),
                vmem_limit_bytes=32 * 1024 * 1024),
        )(x, w, b)

    # (N, PD, C_out, S, S) -> PyTorch layout (N, C_out, PD, S, S); tiny output.
    return jnp.transpose(out, (0, 2, 1, 3, 4))


def _reference_forward(x, weight, bias, inputs_size):
    """Pure-JAX reference with identical semantics (for verification)."""
    N, C_in, D, H, W = x.shape
    C_out = weight.shape[0]
    w = weight.reshape(C_out, C_in)
    y = jnp.einsum("ncdhw,oc->nodhw", x, w) + bias[None, :, None, None, None]
    PD, S = C_out, inputs_size
    db = _adaptive_bounds(D, PD)
    hb = _adaptive_bounds(H, S)
    wb = _adaptive_bounds(W, S)
    res = []
    for (d0, d1) in db:
        for (h0, h1) in hb:
            for (w0, w1) in wb:
                res.append(jnp.max(y[:, :, d0:d1, h0:h1, w0:w1], axis=(2, 3, 4)))
    return jnp.stack(res, axis=-1).reshape(N, C_out, PD, S, S)


if __name__ == "__main__":
    key = jax.random.PRNGKey(0)
    kx1, kx2, kw, kb = jax.random.split(key, 4)

    C_in, C_out, S = 4, 3, 4
    weight = jax.random.normal(kw, (C_out, C_in), dtype=jnp.float32) * 0.1
    bias = jax.random.normal(kb, (C_out,), dtype=jnp.float32) * 0.1

    # Case 1: D % out_channels == 0 -> tiled grid=(N, PD) fast path.
    N, D, H, W = 2, 12, 16, 16
    x1 = jax.random.normal(kx1, (N, C_in, D, H, W), dtype=jnp.float32)
    out1 = jax.block_until_ready(segmentation_head(x1, weight, bias, S))
    ref1 = _reference_forward(x1, weight, bias, S)
    assert out1.shape == (N, C_out, C_out, S, S), out1.shape
    assert jnp.allclose(out1, ref1, atol=1e-5, rtol=1e-5), "tiled path mismatch"

    # Case 2: overlapping adaptive D windows -> general whole-volume path.
    N2, D2 = 2, 16
    x2 = jax.random.normal(kx2, (N2, C_in, D2, H, W), dtype=jnp.float32)
    out2 = jax.block_until_ready(segmentation_head(x2, weight, bias, S))
    ref2 = _reference_forward(x2, weight, bias, S)
    assert out2.shape == (N2, C_out, C_out, S, S), out2.shape
    assert jnp.allclose(out2, ref2, atol=1e-5, rtol=1e-5), "general path mismatch"

    print("KERNEL_OK")
</pallas_src>

<mosaic_0001>
module attributes {stable_mosaic.version = 11 : i64} {
  func.func @_seg_head_window_kernel(%arg0: i32, %arg1: i32, %arg2: memref<1x4x4x16x16xf32, #tpu.memory_space<vmem>>, %arg3: memref<3x4xf32, #tpu.memory_space<smem>>, %arg4: memref<3xf32, #tpu.memory_space<smem>>, %arg5: memref<1x1x3x4x4xf32, #tpu.memory_space<vmem>>) attributes {dimension_semantics = [#tpu.dimension_semantics<parallel>, #tpu.dimension_semantics<parallel>], iteration_bounds = array<i64: 2, 3>, scalar_prefetch = 0 : i64, scratch_operands = 0 : i64, tpu.core_type = #tpu.core_type<tc>, window_params = [{transform_indices = @transform_0, window_bounds = array<i64: 1, 4, 4, 16, 16>}, {transform_indices = @transform_1, window_bounds = array<i64: 3, 4>}, {transform_indices = @transform_2, window_bounds = array<i64: 3>}, {transform_indices = @transform_3, window_bounds = array<i64: 1, 1, 3, 4, 4>}]} {
    %c0 = arith.constant 0 : index
    %c0_0 = arith.constant 0 : index
    %c0_1 = arith.constant 0 : index
    %c0_2 = arith.constant 0 : index
    %c0_3 = arith.constant 0 : index
    %0 = vector.load %arg2[%c0, %c0_0, %c0_1, %c0_2, %c0_3] : memref<1x4x4x16x16xf32, #tpu.memory_space<vmem>>, vector<1x4x4x16x16xf32>
    %1 = vector.shape_cast %0 : vector<1x4x4x16x16xf32> to vector<4x4x16x16xf32>
    %c0_4 = arith.constant 0 : index
    %c0_5 = arith.constant 0 : index
    %2 = memref.load %arg3[%c0_4, %c0_5] : memref<3x4xf32, #tpu.memory_space<smem>>
    %3 = vector.extract_strided_slice %1 {offsets = [0, 0, 0, 0], sizes = [1, 4, 16, 16], strides = [1, 1, 1, 1]} : vector<4x4x16x16xf32> to vector<1x4x16x16xf32>
    %4 = vector.shape_cast %3 : vector<1x4x16x16xf32> to vector<4x16x16xf32>
    %5 = vector.broadcast %2 : f32 to vector<4x16x16xf32>
    %6 = arith.mulf %5, %4 : vector<4x16x16xf32>
    %c0_6 = arith.constant 0 : index
    %c1 = arith.constant 1 : index
    %7 = memref.load %arg3[%c0_6, %c1] : memref<3x4xf32, #tpu.memory_space<smem>>
    %8 = vector.extract_strided_slice %1 {offsets = [1, 0, 0, 0], sizes = [1, 4, 16, 16], strides = [1, 1, 1, 1]} : vector<4x4x16x16xf32> to vector<1x4x16x16xf32>
    %9 = vector.shape_cast %8 : vector<1x4x16x16xf32> to vector<4x16x16xf32>
    %10 = vector.broadcast %7 : f32 to vector<4x16x16xf32>
    %11 = arith.mulf %10, %9 : vector<4x16x16xf32>
    %12 = arith.addf %6, %11 : vector<4x16x16xf32>
    %c0_7 = arith.constant 0 : index
    %c2 = arith.constant 2 : index
    %13 = memref.load %arg3[%c0_7, %c2] : memref<3x4xf32, #tpu.memory_space<smem>>
    %14 = vector.extract_strided_slice %1 {offsets = [2, 0, 0, 0], sizes = [1, 4, 16, 16], strides = [1, 1, 1, 1]} : vector<4x4x16x16xf32> to vector<1x4x16x16xf32>
    %15 = vector.shape_cast %14 : vector<1x4x16x16xf32> to vector<4x16x16xf32>
    %16 = vector.broadcast %13 : f32 to vector<4x16x16xf32>
    %17 = arith.mulf %16, %15 : vector<4x16x16xf32>
    %18 = arith.addf %12, %17 : vector<4x16x16xf32>
    %c0_8 = arith.constant 0 : index
    %c3 = arith.constant 3 : index
    %19 = memref.load %arg3[%c0_8, %c3] : memref<3x4xf32, #tpu.memory_space<smem>>
    %20 = vector.extract_strided_slice %1 {offsets = [3, 0, 0, 0], sizes = [1, 4, 16, 16], strides = [1, 1, 1, 1]} : vector<4x4x16x16xf32> to vector<1x4x16x16xf32>
    %21 = vector.shape_cast %20 : vector<1x4x16x16xf32> to vector<4x16x16xf32>
    %22 = vector.broadcast %19 : f32 to vector<4x16x16xf32>
    %23 = arith.mulf %22, %21 : vector<4x16x16xf32>
    %24 = arith.addf %18, %23 : vector<4x16x16xf32>
    %cst = arith.constant dense<0xFF800000> : vector<16x16xf32>
    %25 = vector.multi_reduction <maximumf>, %24, %cst [0] : vector<4x16x16xf32> to vector<16x16xf32>
    %26 = vector.shape_cast %25 : vector<16x16xf32> to vector<16x4x4xf32>
    %cst_9 = arith.constant dense<0xFF800000> : vector<16x4xf32>
    %27 = vector.multi_reduction <maximumf>, %26, %cst_9 [2] : vector<16x4x4xf32> to vector<16x4xf32>
    %28 = vector.shape_cast %27 : vector<16x4xf32> to vector<4x4x4xf32>
    %cst_10 = arith.constant dense<0xFF800000> : vector<4x4xf32>
    %29 = vector.multi_reduction <maximumf>, %28, %cst_10 [1] : vector<4x4x4xf32> to vector<4x4xf32>
    %c0_11 = arith.constant 0 : index
    %30 = memref.load %arg4[%c0_11] : memref<3xf32, #tpu.memory_space<smem>>
    %31 = vector.broadcast %30 : f32 to vector<4x4xf32>
    %32 = arith.addf %29, %31 : vector<4x4xf32>
    %c0_12 = arith.constant 0 : index
    %c0_13 = arith.constant 0 : index
    %c0_14 = arith.constant 0 : index
    %c0_15 = arith.constant 0 : index
    %c0_16 = arith.constant 0 : index
    %33 = vector.load %arg5[%c0_12, %c0_13, %c0_14, %c0_15, %c0_16] : memref<1x1x3x4x4xf32, #tpu.memory_space<vmem>>, vector<1x1x1x4x4xf32>
    %34 = vector.shape_cast %33 : vector<1x1x1x4x4xf32> to vector<4x4xf32>
    %35 = vector.shape_cast %32 : vector<4x4xf32> to vector<1x1x1x4x4xf32>
    tpu.vector_store %arg5[%c0_12, %c0_13, %c0_14, %c0_15, %c0_16], %35 {strides = array<i32>} : memref<1x1x3x4x4xf32, #tpu.memory_space<vmem>>, vector<1x1x1x4x4xf32>,
    %c1_17 = arith.constant 1 : index
    %c0_18 = arith.constant 0 : index
    %36 = memref.load %arg3[%c1_17, %c0_18] : memref<3x4xf32, #tpu.memory_space<smem>>
    %37 = vector.extract_strided_slice %1 {offsets = [0, 0, 0, 0], sizes = [1, 4, 16, 16], strides = [1, 1, 1, 1]} : vector<4x4x16x16xf32> to vector<1x4x16x16xf32>
    %38 = vector.shape_cast %37 : vector<1x4x16x16xf32> to vector<4x16x16xf32>
    %39 = vector.broadcast %36 : f32 to vector<4x16x16xf32>
    %40 = arith.mulf %39, %38 : vector<4x16x16xf32>
    %c1_19 = arith.constant 1 : index
    %c1_20 = arith.constant 1 : index
    %41 = memref.load %arg3[%c1_19, %c1_20] : memref<3x4xf32, #tpu.memory_space<smem>>
    %42 = vector.extract_strided_slice %1 {offsets = [1, 0, 0, 0], sizes = [1, 4, 16, 16], strides = [1, 1, 1, 1]} : vector<4x4x16x16xf32> to vector<1x4x16x16xf32>
    %43 = vector.shape_cast %42 : vector<1x4x16x16xf32> to vector<4x16x16xf32>
    %44 = vector.broadcast %41 : f32 to vector<4x16x16xf32>
    %45 = arith.mulf %44, %43 : vector<4x16x16xf32>
    %46 = arith.addf %40, %45 : vector<4x16x16xf32>
    %c1_21 = arith.constant 1 : index
    %c2_22 = arith.constant 2 : index
    %47 = memref.load %arg3[%c1_21, %c2_22] : memref<3x4xf32, #tpu.memory_space<smem>>
    %48 = vector.extract_strided_slice %1 {offsets = [2, 0, 0, 0], sizes = [1, 4, 16, 16], strides = [1, 1, 1, 1]} : vector<4x4x16x16xf32> to vector<1x4x16x16xf32>
    %49 = vector.shape_cast %48 : vector<1x4x16x16xf32> to vector<4x16x16xf32>
    %50 = vector.broadcast %47 : f32 to vector<4x16x16xf32>
    %51 = arith.mulf %50, %49 : vector<4x16x16xf32>
    %52 = arith.addf %46, %51 : vector<4x16x16xf32>
    %c1_23 = arith.constant 1 : index
    %c3_24 = arith.constant 3 : index
    %53 = memref.load %arg3[%c1_23, %c3_24] : memref<3x4xf32, #tpu.memory_space<smem>>
    %54 = vector.extract_strided_slice %1 {offsets = [3, 0, 0, 0], sizes = [1, 4, 16, 16], strides = [1, 1, 1, 1]} : vector<4x4x16x16xf32> to vector<1x4x16x16xf32>
    %55 = vector.shape_cast %54 : vector<1x4x16x16xf32> to vector<4x16x16xf32>
    %56 = vector.broadcast %53 : f32 to vector<4x16x16xf32>
    %57 = arith.mulf %56, %55 : vector<4x16x16xf32>
    %58 = arith.addf %52, %57 : vector<4x16x16xf32>
    %cst_25 = arith.constant dense<0xFF800000> : vector<16x16xf32>
    %59 = vector.multi_reduction <maximumf>, %58, %cst_25 [0] : vector<4x16x16xf32> to vector<16x16xf32>
    %60 = vector.shape_cast %59 : vector<16x16xf32> to vector<16x4x4xf32>
    %cst_26 = arith.constant dense<0xFF800000> : vector<16x4xf32>
    %61 = vector.multi_reduction <maximumf>, %60, %cst_26 [2] : vector<16x4x4xf32> to vector<16x4xf32>
    %62 = vector.shape_cast %61 : vector<16x4xf32> to vector<4x4x4xf32>
    %cst_27 = arith.constant dense<0xFF800000> : vector<4x4xf32>
    %63 = vector.multi_reduction <maximumf>, %62, %cst_27 [1] : vector<4x4x4xf32> to vector<4x4xf32>
    %c1_28 = arith.constant 1 : index
    %64 = memref.load %arg4[%c1_28] : memref<3xf32, #tpu.memory_space<smem>>
    %65 = vector.broadcast %64 : f32 to vector<4x4xf32>
    %66 = arith.addf %63, %65 : vector<4x4xf32>
    %c0_29 = arith.constant 0 : index
    %c0_30 = arith.constant 0 : index
    %c1_31 = arith.constant 1 : index
    %c0_32 = arith.constant 0 : index
    %c0_33 = arith.constant 0 : index
    %67 = vector.load %arg5[%c0_29, %c0_30, %c1_31, %c0_32, %c0_33] : memref<1x1x3x4x4xf32, #tpu.memory_space<vmem>>, vector<1x1x1x4x4xf32>
    %68 = vector.shape_cast %67 : vector<1x1x1x4x4xf32> to vector<4x4xf32>
    %69 = vector.shape_cast %66 : vector<4x4xf32> to vector<1x1x1x4x4xf32>
    tpu.vector_store %arg5[%c0_29, %c0_30, %c1_31, %c0_32, %c0_33], %69 {strides = array<i32>} : memref<1x1x3x4x4xf32, #tpu.memory_space<vmem>>, vector<1x1x1x4x4xf32>,
    %c2_34 = arith.constant 2 : index
    %c0_35 = arith.constant 0 : index
    %70 = memref.load %arg3[%c2_34, %c0_35] : memref<3x4xf32, #tpu.memory_space<smem>>
    %71 = vector.extract_strided_slice %1 {offsets = [0, 0, 0, 0], sizes = [1, 4, 16, 16], strides = [1, 1, 1, 1]} : vector<4x4x16x16xf32> to vector<1x4x16x16xf32>
    %72 = vector.shape_cast %71 : vector<1x4x16x16xf32> to vector<4x16x16xf32>
    %73 = vector.broadcast %70 : f32 to vector<4x16x16xf32>
    %74 = arith.mulf %73, %72 : vector<4x16x16xf32>
    %c2_36 = arith.constant 2 : index
    %c1_37 = arith.constant 1 : index
    %75 = memref.load %arg3[%c2_36, %c1_37] : memref<3x4xf32, #tpu.memory_space<smem>>
    %76 = vector.extract_strided_slice %1 {offsets = [1, 0, 0, 0], sizes = [1, 4, 16, 16], strides = [1, 1, 1, 1]} : vector<4x4x16x16xf32> to vector<1x4x16x16xf32>
    %77 = vector.shape_cast %76 : vector<1x4x16x16xf32> to vector<4x16x16xf32>
    %78 = vector.broadcast %75 : f32 to vector<4x16x16xf32>
    %79 = arith.mulf %78, %77 : vector<4x16x16xf32>
    %80 = arith.addf %74, %79 : vector<4x16x16xf32>
    %c2_38 = arith.constant 2 : index
    %c2_39 = arith.constant 2 : index
    %81 = memref.load %arg3[%c2_38, %c2_39] : memref<3x4xf32, #tpu.memory_space<smem>>
    %82 = vector.extract_strided_slice %1 {offsets = [2, 0, 0, 0], sizes = [1, 4, 16, 16], strides = [1, 1, 1, 1]} : vector<4x4x16x16xf32> to vector<1x4x16x16xf32>
    %83 = vector.shape_cast %82 : vector<1x4x16x16xf32> to vector<4x16x16xf32>
    %84 = vector.broadcast %81 : f32 to vector<4x16x16xf32>
    %85 = arith.mulf %84, %83 : vector<4x16x16xf32>
    %86 = arith.addf %80, %85 : vector<4x16x16xf32>
    %c2_40 = arith.constant 2 : index
    %c3_41 = arith.constant 3 : index
    %87 = memref.load %arg3[%c2_40, %c3_41] : memref<3x4xf32, #tpu.memory_space<smem>>
    %88 = vector.extract_strided_slice %1 {offsets = [3, 0, 0, 0], sizes = [1, 4, 16, 16], strides = [1, 1, 1, 1]} : vector<4x4x16x16xf32> to vector<1x4x16x16xf32>
    %89 = vector.shape_cast %88 : vector<1x4x16x16xf32> to vector<4x16x16xf32>
    %90 = vector.broadcast %87 : f32 to vector<4x16x16xf32>
    %91 = arith.mulf %90, %89 : vector<4x16x16xf32>
    %92 = arith.addf %86, %91 : vector<4x16x16xf32>
    %cst_42 = arith.constant dense<0xFF800000> : vector<16x16xf32>
    %93 = vector.multi_reduction <maximumf>, %92, %cst_42 [0] : vector<4x16x16xf32> to vector<16x16xf32>
    %94 = vector.shape_cast %93 : vector<16x16xf32> to vector<16x4x4xf32>
    %cst_43 = arith.constant dense<0xFF800000> : vector<16x4xf32>
    %95 = vector.multi_reduction <maximumf>, %94, %cst_43 [2] : vector<16x4x4xf32> to vector<16x4xf32>
    %96 = vector.shape_cast %95 : vector<16x4xf32> to vector<4x4x4xf32>
    %cst_44 = arith.constant dense<0xFF800000> : vector<4x4xf32>
    %97 = vector.multi_reduction <maximumf>, %96, %cst_44 [1] : vector<4x4x4xf32> to vector<4x4xf32>
    %c2_45 = arith.constant 2 : index
    %98 = memref.load %arg4[%c2_45] : memref<3xf32, #tpu.memory_space<smem>>
    %99 = vector.broadcast %98 : f32 to vector<4x4xf32>
    %100 = arith.addf %97, %99 : vector<4x4xf32>
    %c0_46 = arith.constant 0 : index
    %c0_47 = arith.constant 0 : index
    %c2_48 = arith.constant 2 : index
    %c0_49 = arith.constant 0 : index
    %c0_50 = arith.constant 0 : index
    %101 = vector.load %arg5[%c0_46, %c0_47, %c2_48, %c0_49, %c0_50] : memref<1x1x3x4x4xf32, #tpu.memory_space<vmem>>, vector<1x1x1x4x4xf32>
    %102 = vector.shape_cast %101 : vector<1x1x1x4x4xf32> to vector<4x4xf32>
    %103 = vector.shape_cast %100 : vector<4x4xf32> to vector<1x1x1x4x4xf32>
    tpu.vector_store %arg5[%c0_46, %c0_47, %c2_48, %c0_49, %c0_50], %103 {strides = array<i32>} : memref<1x1x3x4x4xf32, #tpu.memory_space<vmem>>, vector<1x1x1x4x4xf32>,
    return
  }
  func.func @transform_0(%arg0: i32, %arg1: i32) -> (i32, i32, i32, i32, i32) {
    %c0_i32 = arith.constant 0 : i32
    %c0_i32_0 = arith.constant 0 : i32
    %c0_i32_1 = arith.constant 0 : i32
    %c0_i32_2 = arith.constant 0 : i32
    return %arg0, %c0_i32, %arg1, %c0_i32_0, %c0_i32_1 : i32, i32, i32, i32, i32
  }
  func.func @transform_1(%arg0: i32, %arg1: i32) -> (i32, i32) {
    %c0_i32 = arith.constant 0 : i32
    %c0_i32_0 = arith.constant 0 : i32
    %c0_i32_1 = arith.constant 0 : i32
    return %c0_i32, %c0_i32_0 : i32, i32
  }
  func.func @transform_2(%arg0: i32, %arg1: i32) -> i32 {
    %c0_i32 = arith.constant 0 : i32
    %c0_i32_0 = arith.constant 0 : i32
    return %c0_i32 : i32
  }
  func.func @transform_3(%arg0: i32, %arg1: i32) -> (i32, i32, i32, i32, i32) {
    %c0_i32 = arith.constant 0 : i32
    %c0_i32_0 = arith.constant 0 : i32
    %c0_i32_1 = arith.constant 0 : i32
    %c0_i32_2 = arith.constant 0 : i32
    return %arg0, %arg1, %c0_i32, %c0_i32_0, %c0_i32_1 : i32, i32, i32, i32, i32
  }
}

</mosaic_0001>

<bundles_post_ra>
// kernel: tpu_custom_call.1
= control target key start
LH: loop header
LB: loop body
LE: loop exit
PB: predicated region body
PF: predicated region fallthrough
CT: control target
= control target key end

     0   :  { %s2706_s0 = inlined_call_operand.hbm [shape: f32[2,4,12,16,16], index: 0, kind: input, shape index: {}]   ;;  %s2707_s1 = inlined_call_operand.hbm [shape: f32[3,4], index: 1, kind: input, shape index: {}]   ;;  %s2708_s2 = inlined_call_operand.vmem [shape: f32[3], index: 2, kind: input, shape index: {}]   ;;  %s2709_s3 = inlined_call_operand.hbm [shape: f32[2,3,3,4,4], index: 3, kind: output, shape index: {}]  }
   0x1   :  { %2715 = sst [smem:[#allocation21_spill]] %s2707_s1 }
   0x2   :  { %2716 = sst [smem:[#allocation22_spill]] %s2708_s2 }
   0x3   :  { %8 = vsyncpa [#allocation3], 0 }
   0x4   :  { %10 = vsyncpa [#allocation3 + $0x1], 0 }
   0x5   :  { %11 = vsyncpa [#allocation5], 0 }
   0x6   :  { %12 = vsyncpa [#allocation6], 0 }
   0x7   :  { %13 = vsyncpa [#allocation4], 0 }
   0x8   :  { %15 = vsyncpa [#allocation4 + $0x1], 0  ;;  %s1775_s12 = smov 0   ;;  %s1777_s13 = smov 0  }
   0x9   :  { %s1779_s14 = smov 0   ;;  %s1781_s15 = smov 0  }
   0xa   :  { %s1783_s16 = smov 0   ;;  %s1785_s17 = smov 0  }
   0xb   :  { %s1787_s18 = smov 0   ;;  %s1789_s19 = smov 0  }
   0xc LB: > { %2717 = sst [smem:[#allocation17_spill]] %s1729_s17  ;;  %s1454_s20 = sadd.s32 4294967295, %s1737_s19   ;;  %s1737_s19 = sphi %s1789_s19, %s21_s19   ;;  %s1733_s18 = sphi %s1787_s18, %s2735_s18   ;;  %s1729_s17 = sphi %s1785_s17, %s2734_s17   ;;  %s1725_s16 = sphi %s1783_s16, %s2733_s16   ;;  %s1721_s15 = sphi %s1781_s15, %s2732_s15   ;;  %s1717_s14 = sphi %s1779_s14, %s2738_s14   ;;  %s1713_s13 = sphi %s1777_s13, %s2737_s13   ;;  %s1709_s12 = sphi %s1775_s12, %s2736_s12  }
   0xd   : > { %2718 = sst [smem:[#allocation18_spill]] %s1733_s18  ;;  %s1455_s21 = sadd.s32 4294967294, %s1737_s19  }
   0xe   : > { %s30_s22 = sadd.s32 1, %s1729_s17  ;;  %s33_s23 = sadd.s32 1, %s1733_s18 }
   0xf   : > { %p31_p0 = scmp.ge.s32.totalorder %s30_s22, 3  ;;  %s42_s24 = sadd.s32 1, %s1717_s14 }
  0x10   : > { %p49_p1 = scmp.ne.s32.totalorder %s1717_s14, %s1713_s13  ;;  %p50_p2 = scmp.eq.s32.totalorder %s1737_s19, 0 }
  0x11   : > { %s2740_s22 = smov (%p31_p0, %s30_s22), 0  ;;  %s2742_s23 = smov (!%p31_p0, %s33_s23), %s1733_s18 }
  0x12   : > { %2719 = sst [smem:[#allocation19_spill]] %s2740_s22  ;;  %s38_s25 = ssub.s32 %s1729_s17, %s2740_s22 }
  0x13   : > { %p1828_p3 = por %p50_p2, %p49_p1  ;;  %p35_p4 = scmp.ge.s32.totalorder %s2742_s23, 2 }
  0x14   : > { %p55_p5 = scmp.ne.s32.totalorder %s1713_s13, %s1709_s12  ;;  %p1834_p6 = scmp.eq.s32.totalorder %s1454_s20, 0 }
  0x15   : > { %p123_p7 = scmp.eq.s32.totalorder %s1454_s20, 5  ;;  %s2744_s23 = smov (%p35_p4, %s2742_s23), 0 }
  0x16   : > { %2722 = sst [smem:[#allocation20_spill]] %s2744_s23  ;;  %p1842_p8 = por %p1834_p6, %p55_p5 }
  0x17   : > { %p1846_p9 = por %p123_p7, %p49_p1  ;;  %s37_s30 = ssub.s32 %s1733_s18, %s2744_s23 }
  0x18   : > { %p129_p10 = scmp.eq.s32.totalorder %s1455_s21, 5  ;;  %s39_s4 = sor.u32 %s38_s25, %s37_s30 }
  0x19   : > { %s2724_s29 = scalar_select %p1846_p9, 1, 0 }
  0x1a   : > { %p1456_p11 = scmp.ge.s32.totalorder %s1737_s19, 1  ;;  %p40_p12 = scmp.eq.s32.totalorder %s39_s4, 0 }
  0x1b   : > { %p1853_p13 = por %p129_p10, %p55_p5  ;;  %p136_p0 = scmp.lt.s32.totalorder %s1737_s19, 7 }
  0x1c   : > { %s1859_s6 = scalar_select %p40_p12, %s1717_s14, %s42_s24  }
  0x1d   : > { %s2725_s5 = scalar_select %p1853_p13, 1, 0 }
  0x1e   : > { %p1861_p2 = pnand %p1456_p11, %p136_p0  ;;  %s2727_s2 = sld [smem:[#allocation22_spill]] }
  0x1f   : > { %s1739_s20 = smov [#allocation7]   ;;  %s2729_s1 = sld [smem:[#allocation21_spill]] }
  0x20   : > { %p1512_p1 = pneg %p1861_p2 }
  0x22   : > { %p1872_p4 = pnand %p1512_p1, %p1834_p6 }
  0x24   : > { %s158_s10 = sshll.u32 %s2727_s2, 4  ;;  %p1620_p7 = pneg %p1872_p4  ;;  %s159_s10 = int_to_ptr.vmem [resolvable:$true] %s158_s10 }
  0x25   : > { %1515 = dma.hbm_to_smem (!%p1872_p4), %s2729_s1, 64, %s1739_s20, [#allocation5]  }
  0x26   : > { %s1618_s25 = scalar_lea.vmem %s159_s10, 16  ;;  %p1626_p12 = scmp.lt.s32.totalorder %s159_s10, %s159_s10 }
  0x27   : > { %p1619_p5 = scmp.ne.s32.totalorder %s159_s10, %s1618_s25  ;;  %p1627_p0 = scmp.lt.s32.totalorder %s1618_s25, %s1618_s25 }
  0x29   : > { %p1621_p10 = pnand %p1620_p7, %p1619_p5  ;;  %p1628_p1 = por %p1627_p0, %p1626_p12 }
  0x2b   : > { %p1622_p11 = pneg %p1621_p10 }
  0x2d   : > { %p1629_p13 = pnand %p1628_p1, %p1622_p11 }
  0x2f   : > { %1632 = shalt.err (!%p1629_p13)
}
  0x30   : > { %s1740_s30 = smov [#allocation8]   ;;  %p1459_p9 = scmp.ge.s32.totalorder %s1737_s19, 6 }
  0x31   : > { %1518 = dma.vmem_to_smem (!%p1872_p4), %s159_s10, 16, %s1740_s30, [#allocation6]  }
  0x32   : > { %165 = sbr.rel (%p1459_p9) target bundleno = 69 (0x45), region = 24 }
  0x37   : > { %s169_s4 = sand.u32 1, %s1717_s14   ;;  %s1488_s8 = sshll.u32 %s1729_s17, 3 }
  0x38   : > { %s1460_s9 = sshll.u32 %s169_s4, 8  ;;  %s1489_s20 = smul.u32 96, %s1733_s18 }
  0x39   : > { %s1497_s21 = scalar_select %p1828_p3, [#allocation0], [#allocation12] }
  0x3a   : > { %s180_s24 = sadd.s32 %s1489_s20, %s1488_s8  ;;  %s173_s11 = scalar_lea.vmem [#allocation2], %s1460_s9 }
  0x3b   : > { %s195_s10 = sshll.u32 %s173_s11, 4  ;;  %s1463_s25 = sshll.u32 %s180_s24, 7  ;;  %s196_s10 = int_to_ptr.vmem [resolvable:$true] %s195_s10 }
  0x3c   : > { %s187_s30 = sld [smem:[%s1497_s21]]   ;;  %s182_s23 = scalar_lea.hbm %s2706_s0, %s1463_s25 }
  0x3d   : > { %s1741_s22 = smov 3072   ;;  %s1742_s18 = smov 1024  }
  0x3e   : > { %1498 = sst [smem:[#allocation11]] (%p1828_p3), %s1741_s22  ;;  %s1743_s17 = smov 8  }
  0x3f   : > { %1499 = sst [smem:[#allocation11 + $0x1]] (%p1828_p3), %s1742_s18  ;;  %s1744_s9 = smov 128  }
  0x40   : > { %1500 = sst [smem:[#allocation11 + $0x2]] (%p1828_p3), %s1743_s17  ;;  %s170_s1 = scalar_lea.sflag [#allocation3], %s169_s4 }
  0x41   : > { %1501 = sst [smem:[#allocation11 + $0x3]] (%p1828_p3), %s1744_s9  ;;  %s1745_s2 = smov 131072  }
  0x42   : > { %s1464_s8 = sshll.u32 %s187_s30, 26  ;;  %1502 = sst [smem:[#allocation11 + $0x4]] (%p1828_p3), %s1744_s9 }
  0x43   : > { %s1465_s20 = sadd.s32 134217728, %s1464_s8  ;;  %1503 = sst [smem:[#allocation11 + $0x5]] (%p1828_p3), %s1743_s17 }
  0x44   : > { %1504 = dma.general (%p1828_p3), %s182_s23, 4096, %s196_s10, %s170_s1, %s1745_s2, [#allocation11], %s1465_s20, 0  }
  0x45 PF: > { %220 = sbr.rel (%p1861_p2) target bundleno = 500 (0x1f4), region = 32  ;;  %s1911_s18 = sand.u32 (!%p1861_p2), 1, %s1713_s13  }
  0x46   : > { %s1467_s22 = sshll.u32 (!%p1861_p2), %s1911_s18, 8  ;;  %s223_s21 = scalar_lea.sflag (!%p1861_p2), [#allocation3], %s1911_s18 }
  0x47   : > { %s1915_s24 = scalar_lea.vmem (!%p1861_p2), [#allocation2], %s1467_s22 }
  0x4a   : > { %1692 = dma.done.wait (%p1842_p8), %s223_s21, 4096  }
  0x4b   : > { %1694 = vsyncadd (%p1842_p8), %s223_s21, 4294963200 }
  0x4c   : > { %1696 = dma.done.wait (%p1834_p6), [#allocation5], 64  }
  0x4d   : > { %1698 = vsyncadd (%p1834_p6), [#allocation5], 4294967232 }
  0x4e   : > { %1700 = dma.done.wait (%p1834_p6), [#allocation6], 16  }
  0x4f   : > { %1702 = vsyncadd (%p1834_p6), [#allocation6], 4294967280 }
  0x50   : > { %239 = sfence }
  0x51   : > { %s291_s17 = sld [smem:[#allocation7]]  ;;  %v1930_v0 = vld [vmem:[%s1915_s24] sm:$0xff]  ;;  %v1933_v1 = vld [vmem:[%s1915_s24 + $0x10] sm:$0xff]  ;;  %v1950_v6 = vld [vmem:[%s1915_s24 + $0x8] sm:$0xff]  ;;  %vm355_vm0 = vcmask 130048   ;;  %s1746_s25 = smov 120  }
  0x52   : > { %s1470_s23 = sld [smem:[#allocation7 + $0x1]]  ;;  %v1936_v2 = vld [vmem:[%s1915_s24 + $0x20] sm:$0xff]  ;;  %v1939_v3 = vld [vmem:[%s1915_s24 + $0x30] sm:$0xff]  ;;  %v1953_v7 = vld [vmem:[%s1915_s24 + $0x18] sm:$0xff]  ;;  %s1747_s30 = smov 124   ;;  %vm526_vm1 = vcmask 27648  }
  0x53   : > { %s1471_s26 = sld [smem:[#allocation7 + $0x2]]  ;;  %v1942_v4 = vld [vmem:[%s1915_s24 + $0x40] sm:$0xff]  ;;  %v1947_v5 = vld [vmem:[%s1915_s24 + $0x50] sm:$0xff]  ;;  %v1986_v27 = vld [vmem:[%s1915_s24 + $0x28] sm:$0xff]  ;;  %s1748_s1 = smov 116   ;;  %vm575_vm2 = vcmask 1043456  }
  0x54   : > { %s1944_s27 = sld [smem:[#allocation7 + $0x3]]  ;;  %v1956_v8 = vld [vmem:[%s1915_s24 + $0x60] sm:$0xff]  ;;  %v1959_v9 = vld [vmem:[%s1915_s24 + $0x70] sm:$0xff]  ;;  %v1989_v28 = vld [vmem:[%s1915_s24 + $0x38] sm:$0xff]  ;;  %vm632_vm3 = vcmask 1041409   ;;  %s1490_s22 = smul.u32 12, %s1911_s18 }
  0x55   : > { %v1962_v10 = vld [vmem:[%s1915_s24 + $0x80] sm:$0xff]  ;;  %v1965_v12 = vld [vmem:[%s1915_s24 + $0x90] sm:$0xff]  ;;  %v1992_v29 = vld [vmem:[%s1915_s24 + $0x48] sm:$0xff]  ;;  %s2034_s28 = sld [smem:[#allocation7 + $0x80]]  ;;  %vm634_vm4 = vcmask 1042434   ;;  %vm636_vm5 = vcmask 1043459  }
  0x56   : > { %v1968_v13 = vld [vmem:[%s1915_s24 + $0xa0] sm:$0xff]  ;;  %v1971_v14 = vld [vmem:[%s1915_s24 + $0xb0] sm:$0xff]  ;;  %v2016_v43 = vld [vmem:[%s1915_s24 + $0x58] sm:$0xff]  ;;  %s2039_s7 = sld [smem:[#allocation7 + $0x81]]  ;;  %s2580_s21 = scalar_lea.vmem [#allocation9], %s1490_s22 }
  0x57   : > { %v292_v11 = vstv %s291_s17  ;;  %v1995_v30 = vld [vmem:[%s1915_s24 + $0xc0] sm:$0xff]  ;;  %v2006_v35 = vld [vmem:[%s1915_s24 + $0xd0] sm:$0xff]  ;;  %v2019_v44 = vld [vmem:[%s1915_s24 + $0x68] sm:$0xff]  ;;  %s2072_s4 = sld [smem:[#allocation7 + $0x82]]  ;;  %p2730_p6 = scmp.ne.s32.totalorder %s2724_s29, 0 }
  0x58   : > { %v293_v15 = vmul.f32 %v292_v11, %v1930_v0  ;;  %v295_v16 = vmul.f32 %v292_v11, %v1933_v1  ;;  %v297_v17 = vmul.f32 %v292_v11, %v1936_v2  ;;  %v299_v18 = vmul.f32 %v292_v11, %v1939_v3  ;;  %v2009_v36 = vld [vmem:[%s1915_s24 + $0xe0] sm:$0xff]  ;;  %v2012_v37 = vld [vmem:[%s1915_s24 + $0xf0] sm:$0xff]  ;;  %v2022_v45 = vld [vmem:[%s1915_s24 + $0x78] sm:$0xff]  ;;  %s2081_s11 = sld [smem:[#allocation7 + $0x83]] }
  0x59   : > { %v302_v19 = vstv %s1470_s23  ;;  %v1977_v20 = vstv %s1471_s26  ;;  %v294_v21 = vmul.f32 %v292_v11, %v1950_v6  ;;  %v296_v22 = vmul.f32 %v292_v11, %v1953_v7  ;;  %v2032_v57 = vld [vmem:[%s1915_s24 + $0x88] sm:$0xff]  ;;  %s2087_s10 = sld [smem:[#allocation7 + $0x100]]  ;;  %s1491_s23 = smul.u32 3, %s1721_s15 }
  0x5a   : > { %v303_v23 = vmul.f32 %v302_v19, %v1942_v4  ;;  %v305_v24 = vmul.f32 %v302_v19, %v1947_v5  ;;  %v307_v25 = vmul.f32 %v302_v19, %v1956_v8  ;;  %v309_v26 = vmul.f32 %v302_v19, %v1959_v9  ;;  %s2098_s8 = sld [smem:[#allocation7 + $0x101]]  ;;  %s1492_s26 = smul.u32 9, %s1725_s16 }
  0x5b   : > { %v321_v31 = vmul.f32 %v1977_v20, %v1962_v10  ;;  %v323_v32 = vmul.f32 %v1977_v20, %v1965_v12  ;;  %v325_v33 = vmul.f32 %v1977_v20, %v1968_v13  ;;  %v327_v34 = vmul.f32 %v1977_v20, %v1971_v14  ;;  %s2131_s9 = sld [smem:[#allocation7 + $0x102]]  ;;  %s1340_s16 = sshll.u32 %s2580_s21, 4  ;;  %s2645_s16 = int_to_ptr.vmem [resolvable:$true] %s1340_s16 }
  0x5c   : > { %v311_v38 = vadd.f32 %v303_v23, %v293_v15  ;;  %v313_v39 = vadd.f32 %v305_v24, %v295_v16  ;;  %v315_v40 = vadd.f32 %v307_v25, %v297_v17  ;;  %v317_v41 = vadd.f32 %v309_v26, %v299_v18  ;;  %v2042_v16 = vld [vmem:[%s1915_s24 + $0x98] sm:$0xff]  ;;  %v2045_v17 = vld [vmem:[%s1915_s24 + $0xa8] sm:$0xff]  ;;  %s2139_s20 = sld [smem:[#allocation7 + $0x103]]  ;;  %s1337_s15 = sadd.s32 %s1492_s26, %s1491_s23 }
  0x5d   : > { %v338_v42 = vstv %s1944_s27  ;;  %v298_v46 = vmul.f32 %v292_v11, %v1986_v27  ;;  %v300_v47 = vmul.f32 %v292_v11, %v1989_v28  ;;  %v304_v48 = vmul.f32 %v302_v19, %v1992_v29  ;;  %v2048_v18 = vld [vmem:[%s1915_s24 + $0xb8] sm:$0xff]  ;;  %v2051_v23 = vld [vmem:[%s1915_s24 + $0xc8] sm:$0xff]  ;;  %s604_s2 = sld [smem:[#allocation8]]  ;;  %s1485_s27 = sshll.u32 %s1337_s15, 6 }
  0x5e   : > { %v329_v49 = vadd.f32 %v321_v31, %v311_v38  ;;  %v331_v50 = vadd.f32 %v323_v32, %v313_v39  ;;  %v333_v51 = vadd.f32 %v325_v33, %v315_v40  ;;  %v335_v52 = vadd.f32 %v327_v34, %v317_v41  ;;  %v2054_v24 = vld [vmem:[%s1915_s24 + $0xd8] sm:$0xff]  ;;  %v2063_v38 = vld [vmem:[%s1915_s24 + $0xe8] sm:$0xff]  ;;  %s1483_s17 = sld [smem:[#allocation8 + $0x2]] }
  0x5f   : > { %v339_v53 = vmul.f32 %v338_v42, %v1995_v30  ;;  %v341_v54 = vmul.f32 %v338_v42, %v2006_v35  ;;  %v343_v55 = vmul.f32 %v338_v42, %v2009_v36  ;;  %v345_v56 = vmul.f32 %v338_v42, %v2012_v37  ;;  %v2066_v41 = vld [vmem:[%s1915_s24 + $0xf8] sm:$0xff]  ;;  %s1477_s24 = sld [smem:[#allocation8 + $0x1]] }
  0x60   : > { %v306_v58 = vmul.f32 %v302_v19, %v2016_v43  ;;  %v308_v59 = vmul.f32 %v302_v19, %v2019_v44  ;;  %v310_v60 = vmul.f32 %v302_v19, %v2022_v45  ;;  %v312_v61 = vadd.f32 %v304_v48, %v294_v21 }
  0x61   : > { %v347_v62 = vadd.f32 %v339_v53, %v329_v49  ;;  %v349_v63 = vadd.f32 %v341_v54, %v331_v50  ;;  %v351_v11 = vadd.f32 %v343_v55, %v333_v51  ;;  %v353_v15 = vadd.f32 %v345_v56, %v335_v52 }
  0x62   : > { %v314_v19 = vadd.f32 %v306_v58, %v296_v22  ;;  %v316_v21 = vadd.f32 %v308_v59, %v298_v46  ;;  %v318_v25 = vadd.f32 %v310_v60, %v300_v47  ;;  %v322_v26 = vmul.f32 %v1977_v20, %v2032_v57 }
  0x63   : > { %v356_v31 = vsel %vm355_vm0, %v347_v62, -inf  ;;  %v357_v32 = vsel %vm355_vm0, %v349_v63, -inf  ;;  %v358_v33 = vsel %vm355_vm0, %v351_v11, -inf  ;;  %v360_v34 = vsel %vm355_vm0, %v353_v15, -inf }
  0x64   : > { %v359_v39 = vmax.f32 %v356_v31, %v358_v33  ;;  %v361_v40 = vmax.f32 %v357_v32, %v360_v34  ;;  %v324_v22 = vmul.f32 %v1977_v20, %v2042_v16  ;;  %v326_v46 = vmul.f32 %v1977_v20, %v2045_v17 }
  0x65   : > { %v328_v47 = vmul.f32 %v1977_v20, %v2048_v18  ;;  %v330_v48 = vadd.f32 %v322_v26, %v312_v61  ;;  %v340_v49 = vmul.f32 %v338_v42, %v2051_v23  ;;  %v342_v50 = vmul.f32 %v338_v42, %v2054_v24 }
  0x66   : > { %v2078_v51 = vmax.f32 %v359_v39, %v361_v40  ;;  %v332_v52 = vadd.f32 %v324_v22, %v314_v19  ;;  %v334_v53 = vadd.f32 %v326_v46, %v316_v21  ;;  %v344_v54 = vmul.f32 %v338_v42, %v2063_v38 }
  0x67   : > { %v336_v55 = vadd.f32 %v328_v47, %v318_v25  ;;  %v346_v56 = vmul.f32 %v338_v42, %v2066_v41  ;;  %v348_v58 = vadd.f32 %v340_v49, %v330_v48  ;;  %v2085_v59 = vstv %s2034_s28 }
  0x68   : > { %378 = vrot.lane.b32.xlu1 %v2078_v51, %s1746_s25  ;;  %372 = vrot.lane.b32.xlu0 %v2078_v51, %s1747_s30  ;;  %v350_v20 = vadd.f32 %v342_v50, %v332_v52  ;;  %v352_v60 = vadd.f32 %v344_v54, %v334_v53  ;;  %v642_v61 = vmul.f32 %v2085_v59, %v1930_v0  ;;  %v2096_v62 = vstv %s2039_s7 }
  0x69   : > { %v354_v42 = vadd.f32 %v346_v56, %v336_v55  ;;  %v363_v63 = vsel %vm355_vm0, %v348_v58, -inf  ;;  %v644_v11 = vmul.f32 %v2085_v59, %v1933_v1  ;;  %v646_v15 = vmul.f32 %v2085_v59, %v1936_v2 }
  0x6a   : > { %v364_v19 = vsel %vm355_vm0, %v350_v20, -inf  ;;  %v365_v21 = vsel %vm355_vm0, %v352_v60, -inf  ;;  %v648_v25 = vmul.f32 %v2085_v59, %v1939_v3  ;;  %v652_v26 = vmul.f32 %v2096_v62, %v1942_v4 }
  0x6b   : > { %v366_v31 = vmax.f32 %v363_v63, %v365_v21  ;;  %v367_v32 = vsel %vm355_vm0, %v354_v42, -inf  ;;  %v654_v33 = vmul.f32 %v2096_v62, %v1947_v5  ;;  %v656_v34 = vmul.f32 %v2096_v62, %v1956_v8 }
  0x6c   : > { %v368_v39 = vmax.f32 %v364_v19, %v367_v32  ;;  %v658_v40 = vmul.f32 %v2096_v62, %v1959_v9  ;;  %v660_v22 = vadd.f32 %v652_v26, %v642_v61  ;;  %v2119_v46 = vstv %s2072_s4  ;;  %s2650_s4 = scalar_lea.hbm %s2709_s3, %s1485_s27 }
  0x6d   : > { %v662_v47 = vadd.f32 %v654_v33, %v644_v11  ;;  %v664_v48 = vadd.f32 %v656_v34, %v646_v15  ;;  %v670_v49 = vmul.f32 %v2119_v46, %v1962_v10  ;;  %v672_v50 = vmul.f32 %v2119_v46, %v1965_v12 }
  0x6e   : > { %v2125_v52 = vmax.f32 %v366_v31, %v368_v39  ;;  %v666_v53 = vadd.f32 %v658_v40, %v648_v25  ;;  %v674_v54 = vmul.f32 %v2119_v46, %v1968_v13  ;;  %v676_v55 = vmul.f32 %v2119_v46, %v1971_v14 }
  0x6f   : > { %v678_v56 = vadd.f32 %v670_v49, %v660_v22  ;;  %v680_v58 = vadd.f32 %v672_v50, %v662_v47  ;;  %v2134_v20 = vstv %s2081_s11  ;;  %v2137_v60 = vstv %s2087_s10  ;;  %s1325_s11 = scalar_lea.sflag [#allocation4], %s1911_s18  ;;  %s1633_s10 = scalar_lea.vmem %s2645_s16, 192 }
  0x70   : > { %380 = vrot.lane.b32.xlu1 %v2125_v52, %s1746_s25  ;;  %374 = vrot.lane.b32.xlu0 %v2125_v52, %s1747_s30  ;;  %v682_v61 = vadd.f32 %v674_v54, %v664_v48  ;;  %v684_v42 = vadd.f32 %v676_v55, %v666_v53  ;;  %v688_v63 = vmul.f32 %v2134_v20, %v1995_v30  ;;  %v2148_v11 = vstv %s2098_s8  ;;  %p1634_p3 = scmp.ne.s32.totalorder %s2645_s16, %s1633_s10 }
  0x71   : > { %v690_v15 = vmul.f32 %v2134_v20, %v2006_v35  ;;  %v692_v19 = vmul.f32 %v2134_v20, %v2009_v36  ;;  %v694_v21 = vmul.f32 %v2134_v20, %v2012_v37  ;;  %v984_v25 = vmul.f32 %v2137_v60, %v1930_v0 }
  0x72   : > { %v696_v26 = vadd.f32 %v688_v63, %v678_v56  ;;  %v986_v31 = vmul.f32 %v2137_v60, %v1933_v1  ;;  %v988_v32 = vmul.f32 %v2137_v60, %v1936_v2  ;;  %v990_v33 = vmul.f32 %v2137_v60, %v1939_v3  ;;  %p1635_p8 = pnand %p1634_p3, %p2730_p6 }
  0x73   : > { %v698_v34 = vadd.f32 %v690_v15, %v680_v58  ;;  %v700_v39 = vadd.f32 %v692_v19, %v682_v61  ;;  %v702_v40 = vadd.f32 %v694_v21, %v684_v42  ;;  %v994_v22 = vmul.f32 %v2148_v11, %v1942_v4 }
  0x74   : > { %386 = vrot.lane.b32.xlu1 %v2125_v52, %s1748_s1  ;;  %384 = vrot.lane.b32.xlu0 %v2078_v51, %s1748_s1  ;;  %v704_v0 = vsel %vm355_vm0, %v696_v26, -inf  ;;  %v996_v1 = vmul.f32 %v2148_v11, %v1947_v5  ;;  %v998_v2 = vmul.f32 %v2148_v11, %v1956_v8  ;;  %v1000_v3 = vmul.f32 %v2148_v11, %v1959_v9  ;;  %p1636_p9 = pneg %p1635_p8 }
  0x75   : > { %v705_v4 = vsel %vm355_vm0, %v698_v34, -inf  ;;  %v706_v47 = vsel %vm355_vm0, %v700_v39, -inf  ;;  %v708_v48 = vsel %vm355_vm0, %v702_v40, -inf  ;;  %v1002_v49 = vadd.f32 %v994_v22, %v984_v25 }
  0x76   : > { %v707_v50 = vmax.f32 %v704_v0, %v706_v47  ;;  %v709_v53 = vmax.f32 %v705_v4, %v708_v48  ;;  %v1004_v54 = vadd.f32 %v996_v1, %v986_v31  ;;  %v1006_v55 = vadd.f32 %v998_v2, %v988_v32 }
  0x77   : > { %v1008_v56 = vadd.f32 %v1000_v3, %v990_v33  ;;  %v2181_v58 = vstv %s2131_s9  ;;  %v2184_v5 = vstv %s2139_s20  ;;  %v643_v8 = vmul.f32 %v2085_v59, %v1950_v6 }
  0x78   : > { %v2188_v9 = vmax.f32 %v707_v50, %v709_v53  ;;  %v1012_v61 = vmul.f32 %v2181_v58, %v1962_v10  ;;  %v1014_v42 = vmul.f32 %v2181_v58, %v1965_v12  ;;  %v1016_v63 = vmul.f32 %v2181_v58, %v1968_v13 }
  0x79   : > { %v1018_v15 = vmul.f32 %v2181_v58, %v1971_v14  ;;  %v1030_v19 = vmul.f32 %v2184_v5, %v1995_v30  ;;  %v1032_v21 = vmul.f32 %v2184_v5, %v2006_v35  ;;  %v1034_v25 = vmul.f32 %v2184_v5, %v2009_v36 }
  0x7a   : > { %720 = vrot.lane.b32.xlu1 %v2188_v9, %s1747_s30  ;;  %726 = vrot.lane.b32.xlu0 %v2188_v9, %s1746_s25  ;;  %v1020_v10 = vadd.f32 %v1012_v61, %v1002_v49  ;;  %v1022_v12 = vadd.f32 %v1014_v42, %v1004_v54  ;;  %v1024_v13 = vadd.f32 %v1016_v63, %v1006_v55 }
  0x7b   : > { %v1026_v26 = vadd.f32 %v1018_v15, %v1008_v56  ;;  %v1036_v14 = vmul.f32 %v2184_v5, %v2012_v37  ;;  %v645_v30 = vmul.f32 %v2085_v59, %v1953_v7  ;;  %v647_v35 = vmul.f32 %v2085_v59, %v1986_v27 }
  0x7c   : > { %v1038_v36 = vadd.f32 %v1030_v19, %v1020_v10  ;;  %v1040_v31 = vadd.f32 %v1032_v21, %v1022_v12  ;;  %v1042_v32 = vadd.f32 %v1034_v25, %v1024_v13  ;;  %v649_v33 = vmul.f32 %v2085_v59, %v1989_v28 }
  0x7d   : > { %v1044_v34 = vadd.f32 %v1036_v14, %v1026_v26  ;;  %v653_v39 = vmul.f32 %v2096_v62, %v1992_v29  ;;  %v655_v40 = vmul.f32 %v2096_v62, %v2016_v43  ;;  %v657_v37 = vmul.f32 %v2096_v62, %v2019_v44 }
  0x7e   : > { %732 = vrot.lane.b32.xlu1 %v2188_v9, %s1748_s1  ;;  %v1046_v22 = vsel %vm355_vm0, %v1038_v36, -inf  ;;  %v1047_v0 = vsel %vm355_vm0, %v1040_v31, -inf  ;;  %v1048_v1 = vsel %vm355_vm0, %v1042_v32, -inf  ;;  %v659_v59 = vmul.f32 %v2096_v62, %v2022_v45 }
  0x7f   : > { %v1049_v2 = vmax.f32 %v1046_v22, %v1048_v1  ;;  %v1050_v3 = vsel %vm355_vm0, %v1044_v34, -inf  ;;  %v661_v4 = vadd.f32 %v653_v39, %v643_v8  ;;  %v663_v47 = vadd.f32 %v655_v40, %v645_v30 }
  0x80   : > { %v1051_v48 = vmax.f32 %v1047_v0, %v1050_v3  ;;  %v665_v49 = vadd.f32 %v657_v37, %v647_v35  ;;  %v667_v50 = vadd.f32 %v659_v59, %v649_v33  ;;  %v671_v53 = vmul.f32 %v2119_v46, %v2032_v57 }
  0x81   : > { %v673_v54 = vmul.f32 %v2119_v46, %v2042_v16  ;;  %v675_v55 = vmul.f32 %v2119_v46, %v2045_v17  ;;  %v677_v62 = vmul.f32 %v2119_v46, %v2048_v18  ;;  %v689_v56 = vmul.f32 %v2134_v20, %v2051_v23 }
  0x82   : > { %v2240_v8 = vmax.f32 %v1049_v2, %v1051_v48  ;;  %v679_v61 = vadd.f32 %v671_v53, %v661_v4  ;;  %v691_v42 = vmul.f32 %v2134_v20, %v2054_v24  ;;  %v693_v63 = vmul.f32 %v2134_v20, %v2063_v38 }
  0x83   : > { %v681_v15 = vadd.f32 %v673_v54, %v663_v47  ;;  %v683_v19 = vadd.f32 %v675_v55, %v665_v49  ;;  %v685_v21 = vadd.f32 %v677_v62, %v667_v50  ;;  %v695_v25 = vmul.f32 %v2134_v20, %v2066_v41 }
  0x84   : > { %1062 = vrot.lane.b32.xlu1 %v2240_v8, %s1747_s30  ;;  %1068 = vrot.lane.b32.xlu0 %v2240_v8, %s1746_s25  ;;  %v697_v46 = vadd.f32 %v689_v56, %v679_v61  ;;  %v985_v10 = vmul.f32 %v2137_v60, %v1950_v6  ;;  %v987_v12 = vmul.f32 %v2137_v60, %v1953_v7  ;;  %v395_v53 = vlaneseq }
  0x85   : > { %v699_v13 = vadd.f32 %v691_v42, %v681_v15  ;;  %v701_v26 = vadd.f32 %v693_v63, %v683_v19  ;;  %v703_v14 = vadd.f32 %v695_v25, %v685_v21  ;;  %v989_v30 = vmul.f32 %v2137_v60, %v1986_v27 }
  0x86   : > { %v711_v20 = vsel %vm355_vm0, %v697_v46, -inf  ;;  %v991_v35 = vmul.f32 %v2137_v60, %v1989_v28  ;;  %v995_v36 = vmul.f32 %v2148_v11, %v1992_v29  ;;  %v997_v6 = vmul.f32 %v2148_v11, %v2016_v43 }
  0x87   : > { %v712_v31 = vsel %vm355_vm0, %v699_v13, -inf  ;;  %v713_v7 = vsel %vm355_vm0, %v701_v26, -inf  ;;  %v715_v32 = vsel %vm355_vm0, %v703_v14, -inf  ;;  %v999_v27 = vmul.f32 %v2148_v11, %v2019_v44 }
  0x88   : > { %1074 = vrot.lane.b32.xlu1 %v2240_v8, %s1748_s1  ;;  %v714_v33 = vmax.f32 %v711_v20, %v713_v7  ;;  %v716_v28 = vmax.f32 %v712_v31, %v715_v32  ;;  %v1001_v29 = vmul.f32 %v2148_v11, %v2022_v45  ;;  %v1003_v60 = vadd.f32 %v995_v36, %v985_v10 }
  0x89   : > { %v1005_v34 = vadd.f32 %v997_v6, %v987_v12  ;;  %v1007_v43 = vadd.f32 %v999_v27, %v989_v30  ;;  %v1013_v39 = vmul.f32 %v2181_v58, %v2032_v57  ;;  %v1015_v40 = vmul.f32 %v2181_v58, %v2042_v16 }
  0x8a   : > { %v2278_v37 = vmax.f32 %v714_v33, %v716_v28  ;;  %v1009_v44 = vadd.f32 %v1001_v29, %v991_v35  ;;  %v1017_v22 = vmul.f32 %v2181_v58, %v2045_v17  ;;  %v1019_v0 = vmul.f32 %v2181_v58, %v2048_v18 }
  0x8b   : > { %v1021_v1 = vadd.f32 %v1013_v39, %v1003_v60  ;;  %v1023_v45 = vadd.f32 %v1015_v40, %v1005_v34  ;;  %v1031_v11 = vmul.f32 %v2184_v5, %v2051_v23  ;;  %v1033_v57 = vmul.f32 %v2184_v5, %v2054_v24 }
  0x8c   : > { %728 = vrot.lane.b32.xlu1 %v2278_v37, %s1746_s25  ;;  %722 = vrot.lane.b32.xlu0 %v2278_v37, %s1747_s30  ;;  %v1025_v16 = vadd.f32 %v1017_v22, %v1007_v43  ;;  %v1027_v59 = vadd.f32 %v1019_v0, %v1009_v44  ;;  %v1035_v17 = vmul.f32 %v2184_v5, %v2063_v38  ;;  %v2311_v56 = vshrl.u32 %v395_v53, 7 }
  0x8d   : > { %v1037_v18 = vmul.f32 %v2184_v5, %v2066_v41  ;;  %v1039_v58 = vadd.f32 %v1031_v11, %v1021_v1  ;;  %v1041_v2 = vadd.f32 %v1033_v57, %v1023_v45  ;;  %v1749_v41 = vmov 1983009808  }
  0x8e   : > { %v1043_v23 = vadd.f32 %v1035_v17, %v1025_v16  ;;  %v393_v5 = vunpack.c.l.s4 %v1749_v41  ;;  %v1750_v61 = vmov 1934713408  }
  0x8f   : > { %v1045_v3 = vadd.f32 %v1037_v18, %v1027_v59  ;;  %v1053_v24 = vsel %vm355_vm0, %v1039_v58, -inf  ;;  %v1054_v4 = vsel %vm355_vm0, %v1041_v2, -inf  ;;  %v425_v42 = vunpack.c.l.s4 %v1750_v61 }
  0x90   : > { %v1055_v47 = vsel %vm355_vm0, %v1043_v23, -inf  ;;  %734 = vrot.lane.b32.xlu0 %v2278_v37, %s1748_s1  ;;  %v394_v62 = vunpack.c.0.s8 %v393_v5 }
  0x91   : > { %v1056_v48 = vmax.f32 %v1053_v24, %v1055_v47  ;;  %v1057_v49 = vsel %vm355_vm0, %v1045_v3, -inf  ;;  %v426_v10 = vunpack.c.0.s8 %v425_v42 }
  0x92   : > { %v1058_v38 = vmax.f32 %v1054_v4, %v1057_v49  ;;  %v2314_v63 = vsub.s32 %v394_v62, %v2311_v56 }
  0x93   : > { %v2327_v27 = vsub.s32 %v426_v10, %v2311_v56 }
  0x94   : > { %v2302_v50 = vmax.f32 %v1056_v48, %v1058_v38 }
  0x96   : > { %1064 = vrot.lane.b32.xlu1 %v2302_v50, %s1747_s30  ;;  %1070 = vrot.lane.b32.xlu0 %v2302_v50, %s1746_s25  ;;  %s1752_s25 = smov [#allocation9]  }
  0x97   : > { %s1637_s30 = sshll.u32 %s1752_s25, 4  ;;  %s1638_s30 = int_to_ptr.vmem [resolvable:$false] %s1637_s30 }
  0x98   : > { %s1639_s8 = scalar_lea.vmem %s1638_s30, 384  ;;  %p1640_p13 = scmp.lt.s32.totalorder %s2645_s16, %s1638_s30 }
  0x99   : > { %p1641_p2 = scmp.lt.s32.totalorder %s1639_s8, %s1633_s10 }
  0x9a   : > { %1076 = vrot.lane.b32.xlu1 %v2302_v50, %s1748_s1 }
  0x9b   : > { %p1642_p4 = por %p1641_p2, %p1640_p13 }
  0x9d   : > { %p1643_p5 = pnand %p1642_p4, %p1636_p9 }
  0xda   : > { %v379_v54 = vpop.permute.xlu1 %378  ;;  %v373_v55 = vpop.permute.xlu0 %372 }
  0xdb   : > { %v390_v15 = vcombine.low %v2078_v51, %v379_v54  ;;  %v391_v19 = vcombine.high %v2078_v51, %v379_v54 }
  0xdd   : > { %v398_v12 = vrot.slane %v390_v15, %v2314_v63  ;;  %v405_v13 = vrot.slane %v391_v19, %v2314_v63 }
  0xe2   : > { %v381_v21 = vpop.permute.xlu1 %380  ;;  %v375_v25 = vpop.permute.xlu0 %374 }
  0xe3   : > { %v458_v46 = vcombine.low %v2125_v52, %v381_v21  ;;  %v459_v26 = vcombine.high %v2125_v52, %v381_v21 }
  0xe5   : > { %v466_v14 = vrot.slane %v458_v46, %v2314_v63  ;;  %v473_v33 = vrot.slane %v459_v26, %v2314_v63 }
  0xe6   : > { %v387_v30 = vpop.permute.xlu1 %386  ;;  %v385_v20 = vpop.permute.xlu0 %384 }
  0xe7   : > { %v474_v35 = vcombine.low %v375_v25, %v387_v30  ;;  %v475_v36 = vcombine.high %v375_v25, %v387_v30  ;;  %v406_v6 = vcombine.low %v373_v55, %v385_v20  ;;  %v407_v31 = vcombine.high %v373_v55, %v385_v20 }
  0xe9   : > { %v482_v51 = vrot.slane %v474_v35, %v2314_v63  ;;  %v414_v7 = vrot.slane %v406_v6, %v2314_v63  ;;  %v421_v32 = vrot.slane %v407_v31, %v2314_v63  ;;  %v489_v52 = vrot.slane %v475_v36, %v2314_v63 }
  0xeb   : > { %v438_v28 = vcombine.low %v405_v13, %v421_v32  ;;  %v422_v29 = vcombine.low %v398_v12, %v414_v7  ;;  %v491_v60 = vcombine.high %v466_v14, %v482_v51  ;;  %v423_v34 = vcombine.high %v398_v12, %v414_v7 }
  0xec   : > { %v721_v43 = vpop.permute.xlu1 %720  ;;  %v727_v39 = vpop.permute.xlu0 %726  ;;  %v506_v0 = vcombine.low %v473_v33, %v489_v52  ;;  %v439_v1 = vcombine.high %v405_v13, %v421_v32  ;;  %v507_v3 = vcombine.high %v473_v33, %v489_v52  ;;  %v490_v24 = vcombine.low %v466_v14, %v482_v51 }
  0xed   : > { %v446_v40 = vrot.slane %v438_v28, %v2327_v27  ;;  %v2333_v44 = vrot.slane %v422_v29, %v2327_v27  ;;  %v738_v22 = vcombine.low %v2188_v9, %v727_v39  ;;  %v2340_v57 = vrot.slane %v491_v60, %v2327_v27 }
  0xee   : > { %v437_v16 = vrot.slane %v423_v34, %v2327_v27  ;;  %v739_v58 = vcombine.high %v2188_v9, %v727_v39  ;;  %v2348_v23 = vrot.slane %v506_v0, %v2327_v27  ;;  %v453_v49 = vrot.slane %v439_v1, %v2327_v27 }
  0xef   : > { %v539_v45 = vsel %vm526_vm1, %v446_v40, -inf  ;;  %v527_v11 = vsel %vm526_vm1, %v2333_v44, -inf  ;;  %v2345_v2 = vrot.slane %v738_v22, %v2314_v63  ;;  %v557_v4 = vsel %vm526_vm1, %v2340_v57, -inf }
  0xf0   : > { %540 = vmax.xlane.f32.xlu1 %v539_v45  ;;  %528 = vmax.xlane.f32.xlu0 %v527_v11  ;;  %v733_v59 = vpop.permute.xlu1 %732  ;;  %v533_v47 = vsel %vm526_vm1, %v437_v16, -inf  ;;  %v753_v38 = vrot.slane %v739_v58, %v2314_v63  ;;  %v563_v54 = vsel %vm526_vm1, %v2348_v23, -inf  ;;  %v545_v55 = vsel %vm526_vm1, %v453_v49, -inf }
  0xf1   : > { %v754_v17 = vcombine.low %v721_v43, %v733_v59  ;;  %v755_v18 = vcombine.high %v721_v43, %v733_v59  ;;  %v2365_v62 = vrot.slane %v507_v3, %v2327_v27  ;;  %v498_v61 = vrot.slane %v490_v24, %v2327_v27 }
  0xf2   : > { %v1751_v12 = vmov 0.0  }
  0xf3   : > { %v2354_v48 = vrot.slane %v754_v17, %v2314_v63  ;;  %v769_v9 = vrot.slane %v755_v18, %v2314_v63  ;;  %v569_v46 = vsel %vm526_vm1, %v2365_v62, -inf  ;;  %v551_v10 = vsel %vm526_vm1, %v498_v61, -inf }
  0xf4   : > { %558 = vmax.xlane.f32.xlu1 %v557_v4  ;;  %534 = vmax.xlane.f32.xlu0 %v533_v47  ;;  %v455_v13 = vcombine.high %v437_v16, %v1751_v12  ;;  %v456_v36 = vcombine.high %v446_v40, %v1751_v12  ;;  %v522_v39 = vcombine.high %v498_v61, %v1751_v12 }
  0xf5   : > { %v770_v41 = vcombine.low %v2345_v2, %v2354_v48  ;;  %v786_v19 = vcombine.low %v753_v38, %v769_v9  ;;  %v787_v25 = vcombine.high %v753_v38, %v769_v9  ;;  %v454_v40 = vcombine.high %v2333_v44, %v1751_v12 }
  0xf6   : > { %v1063_v5 = vpop.permute.xlu1 %1062  ;;  %v1069_v42 = vpop.permute.xlu0 %1068  ;;  %v536_v32 = vsel %vm526_vm1, %v455_v13, -inf  ;;  %v542_v34 = vsel %vm526_vm1, %v456_v36, -inf  ;;  %v523_v18 = vcombine.high %v2340_v57, %v1751_v12  ;;  %v457_v58 = vcombine.high %v453_v49, %v1751_v12 }
  0xf7   : > { %v2369_v15 = vrot.slane %v770_v41, %v2327_v27  ;;  %v1080_v14 = vcombine.low %v2240_v8, %v1069_v42  ;;  %v2377_v30 = vrot.slane %v787_v25, %v2327_v27  ;;  %v2382_v35 = vrot.slane %v786_v19, %v2327_v27 }
  0xf8   : > { %564 = vmax.xlane.f32.xlu1 %v563_v54  ;;  %546 = vmax.xlane.f32.xlu0 %v545_v55  ;;  %v1081_v6 = vcombine.high %v2240_v8, %v1069_v42  ;;  %v530_v17 = vsel %vm526_vm1, %v454_v40, -inf  ;;  %v554_v3 = vsel %vm526_vm1, %v522_v39, -inf  ;;  %v560_v55 = vsel %vm526_vm1, %v523_v18, -inf }
  0xf9   : > { %v874_v20 = vsel %vm526_vm1, %v2369_v15, -inf  ;;  %v2388_v7 = vcombine.high %v2377_v30, %v1751_v12  ;;  %v2396_v29 = vrot.slane %v1080_v14, %v2314_v63  ;;  %v886_v8 = vsel %vm526_vm1, %v2382_v35, -inf }
  0xfa   : > { %v1075_v21 = vpop.permute.xlu1 %1074  ;;  %v2403_v43 = vrot.slane %v1081_v6, %v2314_v63  ;;  %v548_v61 = vsel %vm526_vm1, %v457_v58, -inf  ;;  %v524_v42 = vcombine.high %v2348_v23, %v1751_v12 }
  0xfb   : > { %v1096_v26 = vcombine.low %v1063_v5, %v1075_v21  ;;  %v1097_v33 = vcombine.high %v1063_v5, %v1075_v21 }
  0xfc   : > { %570 = vmax.xlane.f32.xlu1 %v569_v46  ;;  %552 = vmax.xlane.f32.xlu0 %v551_v10 }
  0xfd   : > { %v2393_v28 = vrot.slane %v1096_v26, %v2314_v63  ;;  %v2409_v0 = vrot.slane %v1097_v33, %v2314_v63 }
  0xfe   : > { %v729_v31 = vpop.permute.xlu1 %728  ;;  %v723_v51 = vpop.permute.xlu0 %722 }
  0xff   : > { %v807_v52 = vcombine.high %v2278_v37, %v729_v31  ;;  %v806_v60 = vcombine.low %v2278_v37, %v729_v31  ;;  %v1112_v37 = vcombine.low %v2396_v29, %v2393_v28  ;;  %v1128_v24 = vcombine.low %v2403_v43, %v2409_v0 }
 0x100   : > { %537 = vmax.xlane.f32.xlu0 %v536_v32  ;;  %875 = vmax.xlane.f32.xlu1 %v874_v20  ;;  %v566_v20 = vsel %vm526_vm1, %v524_v42, -inf  ;;  %v525_v31 = vcombine.high %v2365_v62, %v1751_v12  ;;  %v892_v42 = vsel %vm526_vm1, %v2377_v30, -inf }
 0x101   : > { %v2412_v1 = vrot.slane %v807_v52, %v2314_v63  ;;  %v814_v16 = vrot.slane %v806_v60, %v2314_v63  ;;  %v1120_v38 = vrot.slane %v1112_v37, %v2327_v27  ;;  %v1136_v19 = vrot.slane %v1128_v24, %v2327_v27 }
 0x102   : > { %v735_v22 = vpop.permute.xlu0 %734  ;;  %v572_v60 = vsel %vm526_vm1, %v525_v31, -inf  ;;  %v771_v37 = vcombine.high %v2345_v2, %v2354_v48 }
 0x103   : > { %v822_v45 = vcombine.low %v723_v51, %v735_v22  ;;  %v823_v11 = vcombine.high %v723_v51, %v735_v22  ;;  %v1216_v21 = vsel %vm526_vm1, %v1120_v38, -inf  ;;  %v1228_v51 = vsel %vm526_vm1, %v1136_v19, -inf }
 0x104   : > { %543 = vmax.xlane.f32.xlu0 %v542_v34  ;;  %887 = vmax.xlane.f32.xlu1 %v886_v8  ;;  %v802_v34 = vcombine.high %v2369_v15, %v1751_v12  ;;  %v785_v18 = vrot.slane %v771_v37, %v2327_v27 }
 0x105   : > { %v830_v59 = vrot.slane %v822_v45, %v2314_v63  ;;  %v2419_v44 = vrot.slane %v823_v11, %v2314_v63  ;;  %v804_v11 = vcombine.high %v2382_v35, %v1751_v12  ;;  %v1113_v35 = vcombine.high %v2396_v29, %v2393_v28 }
 0x106   : > { %v877_v15 = vsel %vm526_vm1, %v802_v34, -inf  ;;  %v880_v48 = vsel %vm526_vm1, %v785_v18, -inf }
 0x107   : > { %v839_v4 = vcombine.high %v814_v16, %v830_v59  ;;  %v855_v47 = vcombine.high %v2412_v1, %v2419_v44  ;;  %v838_v10 = vcombine.low %v814_v16, %v830_v59  ;;  %v889_v59 = vsel %vm526_vm1, %v804_v11, -inf }
 0x108   : > { %555 = vmax.xlane.f32.xlu0 %v554_v3  ;;  %531 = vmax.xlane.f32.xlu1 %v530_v17  ;;  %v1065_v9 = vpop.permute.xlu1 %1064  ;;  %v1071_v41 = vpop.permute.xlu0 %1070  ;;  %v1144_v17 = vcombine.high %v1120_v38, %v1751_v12  ;;  %v854_v58 = vcombine.low %v2412_v1, %v2419_v44  ;;  %v1146_v3 = vcombine.high %v1136_v19, %v1751_v12 }
 0x109   : > { %v1148_v5 = vcombine.low %v2302_v50, %v1071_v41  ;;  %v1149_v57 = vcombine.high %v2302_v50, %v1071_v41  ;;  %v2434_v49 = vrot.slane %v839_v4, %v2327_v27  ;;  %v2437_v54 = vrot.slane %v855_v47, %v2327_v27 }
 0x10a   : > { %v846_v32 = vrot.slane %v838_v10, %v2327_v27  ;;  %v1219_v2 = vsel %vm526_vm1, %v1144_v17, -inf  ;;  %v862_v24 = vrot.slane %v854_v58, %v2327_v27  ;;  %v1127_v4 = vrot.slane %v1113_v35, %v2327_v27 }
 0x10b   : > { %v1156_v25 = vrot.slane %v1148_v5, %v2314_v63  ;;  %v1163_v46 = vrot.slane %v1149_v57, %v2314_v63  ;;  %v2449_v14 = vcombine.high %v2434_v49, %v1751_v12  ;;  %v2453_v23 = vcombine.high %v2437_v54, %v1751_v12 }
 0x10c   : > { %561 = vmax.xlane.f32.xlu0 %v560_v55  ;;  %549 = vmax.xlane.f32.xlu1 %v548_v61  ;;  %v1077_v50 = vpop.permute.xlu1 %1076  ;;  %v898_v62 = vsel %vm526_vm1, %v846_v32, -inf  ;;  %v1231_v47 = vsel %vm526_vm1, %v1146_v3, -inf  ;;  %v910_v1 = vsel %vm526_vm1, %v862_v24, -inf  ;;  %v870_v44 = vcombine.high %v846_v32, %v1751_v12 }
 0x10d   : > { %v1164_v13 = vcombine.low %v1065_v9, %v1077_v50  ;;  %v1165_v26 = vcombine.high %v1065_v9, %v1077_v50  ;;  %v1222_v29 = vsel %vm526_vm1, %v1127_v4, -inf  ;;  %v803_v55 = vcombine.high %v785_v18, %v1751_v12 }
 0x10e   : > { %v901_v28 = vsel %vm526_vm1, %v870_v44, -inf  ;;  %v904_v61 = vsel %vm526_vm1, %v2434_v49, -inf  ;;  %v872_v19 = vcombine.high %v862_v24, %v1751_v12  ;;  %v916_v49 = vsel %vm526_vm1, %v2437_v54, -inf }
 0x10f   : > { %v1172_v36 = vrot.slane %v1164_v13, %v2314_v63  ;;  %v1179_v6 = vrot.slane %v1165_v26, %v2314_v63  ;;  %v883_v50 = vsel %vm526_vm1, %v803_v55, -inf  ;;  %v919_v26 = vsel %vm526_vm1, %v2453_v23, -inf }
 0x110   : > { %567 = vmax.xlane.f32.xlu0 %v566_v20  ;;  %1217 = vmax.xlane.f32.xlu1 %v1216_v21  ;;  %v1129_v21 = vcombine.high %v2403_v43, %v2409_v0  ;;  %v895_v20 = vsel %vm526_vm1, %v2388_v7, -inf  ;;  %v615_v3 = vand.u32 127, %v395_v53 }
 0x111   : > { %v1180_v33 = vcombine.low %v1156_v25, %v1172_v36  ;;  %v1181_v52 = vcombine.high %v1156_v25, %v1172_v36  ;;  %v1197_v8 = vcombine.high %v1163_v46, %v1179_v6  ;;  %v1196_v9 = vcombine.low %v1163_v46, %v1179_v6 }
 0x112   : > { %v913_v25 = vsel %vm526_vm1, %v872_v19, -inf  ;;  %v1143_v46 = vrot.slane %v1129_v21, %v2327_v27  ;;  %v1145_v36 = vcombine.high %v1127_v4, %v1751_v12  ;;  %v2560_v55 = vsub.s32 %v615_v3, %v2311_v56 }
 0x113   : > { %v2466_v39 = vrot.slane %v1181_v52, %v2327_v27  ;;  %v2469_v63 = vrot.slane %v1197_v8, %v2327_v27  ;;  %v1188_v40 = vrot.slane %v1180_v33, %v2327_v27  ;;  %v1204_v38 = vrot.slane %v1196_v9, %v2327_v27 }
 0x114   : > { %573 = vmax.xlane.f32.xlu0 %v572_v60  ;;  %1229 = vmax.xlane.f32.xlu1 %v1228_v51  ;;  %v1234_v30 = vsel %vm526_vm1, %v1143_v46, -inf  ;;  %v1147_v10 = vcombine.high %v1143_v46, %v1751_v12  ;;  %v907_v27 = vsel %vm526_vm1, %v2449_v14, -inf  ;;  %v1225_v6 = vsel %vm526_vm1, %v1145_v36, -inf }
 0x115   : > { %v2475_v22 = vcombine.high %v2466_v39, %v1751_v12  ;;  %v2479_v45 = vcombine.high %v2469_v63, %v1751_v12  ;;  %v1240_v16 = vsel %vm526_vm1, %v1188_v40, -inf  ;;  %v1212_v41 = vcombine.high %v1188_v40, %v1751_v12 }
 0x116   : > { %v1252_v5 = vsel %vm526_vm1, %v1204_v38, -inf  ;;  %v1214_v13 = vcombine.high %v1204_v38, %v1751_v12  ;;  %v1237_v43 = vsel %vm526_vm1, %v1147_v10, -inf  ;;  %v1246_v54 = vsel %vm526_vm1, %v2466_v39, -inf }
 0x117   : > { %v1243_v57 = vsel %vm526_vm1, %v1212_v41, -inf  ;;  %v1258_v14 = vsel %vm526_vm1, %v2469_v63, -inf  ;;  %v1249_v31 = vsel %vm526_vm1, %v2475_v22, -inf  ;;  %v1261_v23 = vsel %vm526_vm1, %v2479_v45, -inf }
 0x118   : > { %878 = vmax.xlane.f32.xlu0 %v877_v15  ;;  %899 = vmax.xlane.f32.xlu1 %v898_v62  ;;  %v1255_v0 = vsel %vm526_vm1, %v1214_v13, -inf }
 0x11c   : > { %890 = vmax.xlane.f32.xlu0 %v889_v59  ;;  %1241 = vmax.xlane.f32.xlu1 %v1240_v16 }
 0x120   : > { %1220 = vmax.xlane.f32.xlu0 %v1219_v2  ;;  %881 = vmax.xlane.f32.xlu1 %v880_v48 }
 0x124   : > { %1232 = vmax.xlane.f32.xlu0 %v1231_v47  ;;  %911 = vmax.xlane.f32.xlu1 %v910_v1 }
 0x128   : > { %902 = vmax.xlane.f32.xlu0 %v901_v28  ;;  %1223 = vmax.xlane.f32.xlu1 %v1222_v29  ;;  %v605_v28 = vstv %s604_s2 }
 0x12c   : > { %1253 = vmax.xlane.f32.xlu1 %v1252_v5  ;;  %1244 = vmax.xlane.f32.xlu0 %v1243_v57 }
 0x130   : > { %905 = vmax.xlane.f32.xlu1 %v904_v61  ;;  %893 = vmax.xlane.f32.xlu0 %v892_v42 }
 0x134   : > { %884 = vmax.xlane.f32.xlu1 %v883_v50  ;;  %914 = vmax.xlane.f32.xlu0 %v913_v25 }
 0x138   : > { %917 = vmax.xlane.f32.xlu1 %v916_v49  ;;  %1235 = vmax.xlane.f32.xlu0 %v1234_v30 }
 0x13c   : > { %1238 = vmax.xlane.f32.xlu1 %v1237_v43  ;;  %1256 = vmax.xlane.f32.xlu0 %v1255_v0 }
 0x140   : > { %908 = vmax.xlane.f32.xlu1 %v907_v27  ;;  %1247 = vmax.xlane.f32.xlu0 %v1246_v54 }
 0x144   : > { %920 = vmax.xlane.f32.xlu1 %v919_v26  ;;  %896 = vmax.xlane.f32.xlu0 %v895_v20 }
 0x148   : > { %1226 = vmax.xlane.f32.xlu0 %v1225_v6 }
 0x14c   : > { %1259 = vmax.xlane.f32.xlu0 %v1258_v14 }
 0x150   : > { %1250 = vmax.xlane.f32.xlu0 %v1249_v31 }
 0x154   : > { %1262 = vmax.xlane.f32.xlu0 %v1261_v23 }
 0x179   : > { %v541_v7 = vpop.xlane.xlu1 %540  ;;  %v529_v51 = vpop.xlane.xlu0 %528 }
 0x17a   : > { %v583_v22 = vsel %vm575_vm2, %v541_v7, -inf  ;;  %v576_v37 = vsel %vm575_vm2, %v529_v51, -inf }
 0x17d   : > { %v559_v12 = vpop.xlane.xlu1 %558  ;;  %v535_v32 = vpop.xlane.xlu0 %534 }
 0x17e   : > { %v593_v35 = vsel %vm575_vm2, %v559_v12, -inf  ;;  %v579_v2 = vsel %vm575_vm2, %v535_v32, -inf }
 0x181   : > { %v565_v33 = vpop.xlane.xlu1 %564  ;;  %v547_v52 = vpop.xlane.xlu0 %546 }
 0x182   : > { %v586_v48 = vsel %vm575_vm2, %v547_v52, -inf  ;;  %v597_v21 = vsel %vm575_vm2, %v565_v33, -inf }
 0x185   : > { %v571_v8 = vpop.xlane.xlu1 %570  ;;  %v553_v60 = vpop.xlane.xlu0 %552 }
 0x186   : > { %v590_v16 = vsel %vm575_vm2, %v553_v60, -inf  ;;  %v600_v46 = vsel %vm575_vm2, %v571_v8, -inf }
 0x189   : > { %v2542_v34 = vpop.xlane.xlu1 %875  ;;  %v538_v39 = vpop.xlane.xlu0 %537 }
 0x18a   : > { %v581_v9 = vsel %vm575_vm2, %v538_v39, -inf }
 0x18d   : > { %v2544_v63 = vpop.xlane.xlu1 %887  ;;  %v544_v62 = vpop.xlane.xlu0 %543 }
 0x18e   : > { %v584_v40 = vsel %vm575_vm2, %v544_v62, -inf }
 0x18f   : > { %v585_v45 = vmax.f32 %v583_v22, %v584_v40 }
 0x191   : > { %v532_v15 = vpop.xlane.xlu1 %531  ;;  %v556_v11 = vpop.xlane.xlu0 %555  ;;  %v587_v47 = vmax.f32 %v585_v45, %v586_v48 }
 0x192   : > { %v577_v59 = vsel %vm575_vm2, %v532_v15, -inf  ;;  %v591_v17 = vsel %vm575_vm2, %v556_v11, -inf }
 0x193   : > { %v578_v18 = vmax.f32 %v576_v37, %v577_v59  ;;  %v592_v58 = vmax.f32 %v590_v16, %v591_v17 }
 0x195   : > { %v580_v24 = vmax.f32 %v578_v18, %v579_v2  ;;  %v550_v4 = vpop.xlane.xlu1 %549  ;;  %v594_v1 = vmax.f32 %v592_v58, %v593_v35  ;;  %v562_v44 = vpop.xlane.xlu0 %561  ;;  %v922_v58 = vsel %vm575_vm2, %v2542_v34, -inf }
 0x196   : > { %v588_v29 = vsel %vm575_vm2, %v550_v4, -inf  ;;  %v595_v38 = vsel %vm575_vm2, %v562_v44, -inf  ;;  %v929_v44 = vsel %vm575_vm2, %v2544_v63, -inf }
 0x197   : > { %v582_v41 = vmax.f32 %v580_v24, %v581_v9  ;;  %v589_v5 = vmax.f32 %v587_v47, %v588_v29  ;;  %v596_v57 = vmax.f32 %v594_v1, %v595_v38 }
 0x199   : > { %v606_v61 = vadd.f32 %v605_v28, %v582_v41  ;;  %v607_v53 = vadd.f32 %v605_v28, %v589_v5  ;;  %v2562_v42 = vpop.xlane.xlu1 %1217  ;;  %v568_v19 = vpop.xlane.xlu0 %567  ;;  %v608_v49 = vadd.f32 %v605_v28, %v596_v57 }
 0x19a   : > { %v598_v50 = vsel %vm575_vm2, %v568_v19, -inf }
 0x19b   : > { %v599_v25 = vmax.f32 %v597_v21, %v598_v50  ;;  %v619_v30 = vrot.slane %v606_v61, %v2560_v55  ;;  %v623_v10 = vrot.slane %v607_v53, %v2560_v55  ;;  %v627_v54 = vrot.slane %v608_v49, %v2560_v55 }
 0x19c   : > { %v951_v21 = vstv %s1477_s24 }
 0x19d   : > { %v2569_v56 = vpop.xlane.xlu1 %1229  ;;  %v601_v13 = vmax.f32 %v599_v25, %v600_v46  ;;  %v574_v43 = vpop.xlane.xlu0 %573  ;;  %v633_v26 = vsel %vm632_vm3, %v623_v10, %v619_v30  ;;  %v1264_v10 = vsel %vm575_vm2, %v2562_v42, -inf }
 0x19e   : > { %v602_v0 = vsel %vm575_vm2, %v574_v43, -inf  ;;  %v635_v31 = vsel %vm634_vm4, %v627_v54, %v633_v26 }
 0x19f   : > { %v603_v27 = vmax.f32 %v601_v13, %v602_v0 }
 0x1a1   : > { %v609_v20 = vadd.f32 %v605_v28, %v603_v27  ;;  %v900_v36 = vpop.xlane.xlu1 %899  ;;  %v879_v6 = vpop.xlane.xlu0 %878 }
 0x1a2   : > { %v923_v16 = vsel %vm575_vm2, %v879_v6, -inf  ;;  %v936_v2 = vsel %vm575_vm2, %v900_v36, -inf }
 0x1a3   : > { %v631_v14 = vrot.slane %v609_v20, %v2560_v55  ;;  %v924_v48 = vmax.f32 %v922_v58, %v923_v16 }
 0x1a5   : > { %v637_v23 = vsel %vm636_vm5, %v631_v14, %v635_v31  ;;  %v2578_v7 = vpop.xlane.xlu1 %1241  ;;  %v891_v51 = vpop.xlane.xlu0 %890  ;;  %v1271_v14 = vsel %vm575_vm2, %v2569_v56, -inf }
 0x1a6   : > { %639 = vst.msk [vmem:[%s2580_s21] sm:$0xf] %vm526_vm1, %v637_v23  ;;  %v930_v24 = vsel %vm575_vm2, %v891_v51, -inf  ;;  %v1278_v16 = vsel %vm575_vm2, %v2578_v7, -inf }
 0x1a7   : > { %v931_v61 = vmax.f32 %v929_v44, %v930_v24 }
 0x1a9   : > { %v882_v12 = vpop.xlane.xlu1 %881  ;;  %v1221_v32 = vpop.xlane.xlu0 %1220 }
 0x1aa   : > { %v925_v35 = vsel %vm575_vm2, %v882_v12, -inf  ;;  %v1265_v25 = vsel %vm575_vm2, %v1221_v32, -inf }
 0x1ab   : > { %v926_v9 = vmax.f32 %v924_v48, %v925_v35  ;;  %v1266_v36 = vmax.f32 %v1264_v10, %v1265_v25  ;;  %v1293_v35 = vstv %s1483_s17 }
 0x1ad   : > { %v912_v33 = vpop.xlane.xlu1 %911  ;;  %v1233_v52 = vpop.xlane.xlu0 %1232 }
 0x1ae   : > { %v943_v34 = vsel %vm575_vm2, %v912_v33, -inf  ;;  %v1272_v13 = vsel %vm575_vm2, %v1233_v52, -inf }
 0x1af   : > { %v1273_v12 = vmax.f32 %v1271_v14, %v1272_v13 }
 0x1b1   : > { %v1224_v8 = vpop.xlane.xlu1 %1223  ;;  %v903_v60 = vpop.xlane.xlu0 %902 }
 0x1b2   : > { %v937_v59 = vsel %vm575_vm2, %v903_v60, -inf  ;;  %v1267_v27 = vsel %vm575_vm2, %v1224_v8, -inf }
 0x1b3   : > { %v938_v4 = vmax.f32 %v936_v2, %v937_v59  ;;  %v1268_v32 = vmax.f32 %v1266_v36, %v1267_v27 }
 0x1b5   : > { %v2584_v39 = vpop.xlane.xlu1 %1253  ;;  %v1245_v62 = vpop.xlane.xlu0 %1244 }
 0x1b6   : > { %v1285_v7 = vsel %vm575_vm2, %v2584_v39, -inf }
 0x1b9   : > { %v906_v40 = vpop.xlane.xlu1 %905  ;;  %v894_v22 = vpop.xlane.xlu0 %893 }
 0x1ba   : > { %v939_v3 = vsel %vm575_vm2, %v906_v40, -inf  ;;  %v932_v41 = vsel %vm575_vm2, %v894_v22, -inf  ;;  %v1279_v40 = vsel %vm575_vm2, %v1245_v62, -inf }
 0x1bb   : > { %v940_v38 = vmax.f32 %v938_v4, %v939_v3  ;;  %v933_v63 = vmax.f32 %v931_v61, %v932_v41  ;;  %v1280_v62 = vmax.f32 %v1278_v16, %v1279_v40 }
 0x1bd   : > { %v885_v45 = vpop.xlane.xlu1 %884  ;;  %v915_v15 = vpop.xlane.xlu0 %914 }
 0x1be   : > { %v927_v47 = vsel %vm575_vm2, %v885_v45, -inf  ;;  %v944_v1 = vsel %vm575_vm2, %v915_v15, -inf }
 0x1bf   : > { %v928_v53 = vmax.f32 %v926_v9, %v927_v47  ;;  %v945_v19 = vmax.f32 %v943_v34, %v944_v1 }
 0x1c1   : > { %v918_v11 = vpop.xlane.xlu1 %917  ;;  %v1236_v37 = vpop.xlane.xlu0 %1235  ;;  %v952_v54 = vadd.f32 %v951_v21, %v928_v53 }
 0x1c2   : > { %v946_v5 = vsel %vm575_vm2, %v918_v11, -inf  ;;  %v1274_v31 = vsel %vm575_vm2, %v1236_v37, -inf }
 0x1c3   : > { %v947_v46 = vmax.f32 %v945_v19, %v946_v5  ;;  %v963_v52 = vrot.slane %v952_v54, %v2560_v55  ;;  %v1275_v22 = vmax.f32 %v1273_v12, %v1274_v31 }
 0x1c5   : > { %v1239_v17 = vpop.xlane.xlu1 %1238  ;;  %v2588_v18 = vpop.xlane.xlu0 %1256 }
 0x1c6   : > { %v1276_v8 = vsel %vm575_vm2, %v1239_v17, -inf  ;;  %v1286_v48 = vsel %vm575_vm2, %v2588_v18, -inf }
 0x1c7   : > { %v1277_v59 = vmax.f32 %v1275_v22, %v1276_v8  ;;  %v1287_v9 = vmax.f32 %v1285_v7, %v1286_v48 }
 0x1c9   : > { %v909_v28 = vpop.xlane.xlu1 %908  ;;  %v1248_v29 = vpop.xlane.xlu0 %1247  ;;  %v1295_v47 = vadd.f32 %v1293_v35, %v1277_v59 }
 0x1ca   : > { %v941_v57 = vsel %vm575_vm2, %v909_v28, -inf  ;;  %v1281_v17 = vsel %vm575_vm2, %v1248_v29, -inf }
 0x1cb   : > { %v942_v50 = vmax.f32 %v940_v38, %v941_v57  ;;  %v1282_v24 = vmax.f32 %v1280_v62, %v1281_v17  ;;  %v1309_v41 = vrot.slane %v1295_v47, %v2560_v55 }
 0x1cd   : > { %v921_v49 = vpop.xlane.xlu1 %920  ;;  %v897_v30 = vpop.xlane.xlu0 %896  ;;  %v954_v6 = vadd.f32 %v951_v21, %v942_v50 }
 0x1ce   : > { %v948_v43 = vsel %vm575_vm2, %v921_v49, -inf  ;;  %v934_v0 = vsel %vm575_vm2, %v897_v30, -inf }
 0x1cf   : > { %v949_v26 = vmax.f32 %v947_v46, %v948_v43  ;;  %v935_v20 = vmax.f32 %v933_v63, %v934_v0  ;;  %v971_v56 = vrot.slane %v954_v6, %v2560_v55 }
 0x1d1   : > { %v955_v42 = vadd.f32 %v951_v21, %v949_v26  ;;  %v953_v23 = vadd.f32 %v951_v21, %v935_v20  ;;  %v1227_v51 = vpop.xlane.xlu0 %1226 }
 0x1d2   : > { %v1269_v33 = vsel %vm575_vm2, %v1227_v51, -inf }
 0x1d3   : > { %v967_v60 = vrot.slane %v953_v23, %v2560_v55  ;;  %v1270_v45 = vmax.f32 %v1268_v32, %v1269_v33  ;;  %v975_v15 = vrot.slane %v955_v42, %v2560_v55 }
 0x1d5   : > { %v976_v11 = vsel %vm632_vm3, %v967_v60, %v963_v52  ;;  %v1260_v37 = vpop.xlane.xlu0 %1259  ;;  %v1294_v3 = vadd.f32 %v1293_v35, %v1270_v45 }
 0x1d6   : > { %v977_v58 = vsel %vm634_vm4, %v971_v56, %v976_v11  ;;  %v1288_v1 = vsel %vm575_vm2, %v1260_v37, -inf }
 0x1d7   : > { %v978_v2 = vsel %vm636_vm5, %v975_v15, %v977_v58  ;;  %v1305_v18 = vrot.slane %v1294_v3, %v2560_v55  ;;  %v1289_v28 = vmax.f32 %v1287_v9, %v1288_v1 }
 0x1d8   : > { %1478 = vst.msk [vmem:[%s2580_s21 + $0x4] sm:$0xf] %vm526_vm1, %v978_v2 }
 0x1d9   : > { %v1251_v4 = vpop.xlane.xlu0 %1250  ;;  %v1318_v61 = vsel %vm632_vm3, %v1309_v41, %v1305_v18 }
 0x1da   : > { %v1283_v44 = vsel %vm575_vm2, %v1251_v4, -inf }
 0x1db   : > { %v1284_v34 = vmax.f32 %v1282_v24, %v1283_v44 }
 0x1dd   : > { %v1296_v29 = vadd.f32 %v1293_v35, %v1284_v34  ;;  %v1263_v38 = vpop.xlane.xlu0 %1262 }
 0x1de   : > { %v1290_v39 = vsel %vm575_vm2, %v1263_v38, -inf }
 0x1df   : > { %v1313_v5 = vrot.slane %v1296_v29, %v2560_v55  ;;  %v1291_v57 = vmax.f32 %v1289_v28, %v1290_v39 }
 0x1e1   : > { %v1319_v53 = vsel %vm634_vm4, %v1313_v5, %v1318_v61  ;;  %v1297_v19 = vadd.f32 %v1293_v35, %v1291_v57 }
 0x1e3   : > { %v1317_v21 = vrot.slane %v1297_v19, %v2560_v55 }
 0x1e5   : > { %v1320_v50 = vsel %vm636_vm5, %v1317_v21, %v1319_v53 }
 0x1e6   : > { %1484 = vst.msk [vmem:[%s2580_s21 + $0x8] sm:$0xf] %vm526_vm1, %v1320_v50 }
 0x1e7   : > { %1646 = shalt.err (!%p1643_p5)
}
 0x1e8   : > { %s1647_s9 = scalar_lea.hbm %s2650_s4, 192  ;;  %s1651_s2 = scalar_lea.hbm %s2709_s3, 1152 }
 0x1e9   : > { %p1648_p7 = scmp.ne.s32.totalorder %s2650_s4, %s1647_s9  ;;  %p1652_p12 = scmp.lt.s32.totalorder %s2650_s4, %s2709_s3 }
 0x1ea   : > { %p1653_p0 = scmp.lt.s32.totalorder %s1651_s2, %s1647_s9 }
 0x1eb   : > { %p1649_p10 = pnand %p1648_p7, %p2730_p6 }
 0x1ec   : > { %p1654_p1 = por %p1653_p0, %p1652_p12 }
 0x1ed   : > { %p1650_p11 = pneg %p1649_p10 }
 0x1ef   : > { %p1655_p3 = pnand %p1654_p1, %p1650_p11 }
 0x1f1   : > { %1658 = shalt.err (!%p1655_p3)
}
 0x1f2   : > { %s1753_s24 = smov 64   ;;  %s1754_s17 = smov 4  }
 0x1f3   : > { %1510 = dma.vmem_to_hbm [thread:$0]  (%p2730_p6), %s2645_s16, 192, %s2650_s4, %s1325_s11, %s1753_s24, %s1753_s24, %s1754_s17  }
 0x1f4 PF: > { %p1527_p8 = scmp.ge.s32.totalorder %s1737_s19, 2  ;;  %s1355_s23 = sand.u32 1, %s1709_s12  }
 0x1f5   : > { %p2731_p9 = scmp.ne.s32.totalorder %s2725_s5, 0  ;;  %s1356_s26 = scalar_lea.sflag [#allocation4], %s1355_s23 }
 0x1f7   : > { %p1520_p13 = pnand %p1527_p8, %p2731_p9 }
 0x1f9   : > { %p1521_p2 = pneg %p1520_p13 }
 0x1fb   : > { %1704 = dma.done.wait (%p1521_p2), %s1356_s26, 192  }
 0x1fc   : > { %1706 = vsyncadd (%p1521_p2), %s1356_s26, 4294967104  ;;  %s21_s19 = sadd.s32 1, %s1737_s19   ;;  %s2732_s15 = sld [smem:[#allocation17_spill]] }
 0x1fd   : > { %p18_p4 = scmp.ge.s32.totalorder %s21_s19, 8   ;;  %s2733_s16 = sld [smem:[#allocation18_spill]] }
 0x1fe   : > { %s2734_s17 = sld [smem:[#allocation19_spill]]  ;;  %s2736_s12 = smov %s1713_s13 }
 0x1ff   : > { %s2735_s18 = sld [smem:[#allocation20_spill]]  ;;  %s2737_s13 = smov %s1717_s14 }
 0x200   : > { %s2738_s14 = smov %s1859_s6  ;;  %20 = sbr.rel (!%p18_p4) target bundleno = 12 (0xc), region = 94 }
 0x205   :  { %1361 = vsyncpa [#allocation3], 1 }
 0x206   :  { %1363 = vsyncpa [#allocation3 + $0x1], 1 }
 0x207   :  { %1364 = vsyncpa [#allocation4], 1 }
 0x208   :  { %1366 = vsyncpa [#allocation4 + $0x1], 1 }
 0x209   :  { %1367 = vsyncpa [#allocation5], 1 }
 0x20a   :  { %1369 = vsyncpa [#allocation5 + $0x1], 1 }
 0x20b   :  { %1370 = vsyncpa [#allocation6], 1 }
 0x20c   :  { %1372 = vsyncpa [#allocation6 + $0x1], 1 }

</bundles_post_ra>
